<compile_context>
chip_gen: v7x
topology: tpu7x:2x2x1
jax: 0.10.0
libtpu: 0.0.40
codegen_flags: <defaults>
</compile_context>

<pallas_src>
import functools

import jax
import jax.numpy as jnp
from jax import lax
from jax.experimental import pallas as pl
from jax.experimental.pallas import tpu as pltpu


def _round_up(x, m):
    return (x + m - 1) // m * m


def _vmem_block_bytes(shape, dtype):
    """Rough VMEM footprint of one block, including (sublane, lane) tile padding."""
    itemsize = jnp.dtype(dtype).itemsize
    sub = 8 * (4 // itemsize)            # 8 for f32, 16 for bf16
    lead = 1
    for d in shape[:-2]:
        lead *= int(d)
    return lead * _round_up(int(shape[-2]), sub) * _round_up(int(shape[-1]), 128) * itemsize


def _vmem_capacity_bytes():
    try:
        return int(pltpu.get_tpu_info().vmem_capacity_bytes)
    except Exception:                    # conservative fallback (v7x-sized budget)
        return 64 * 2 ** 20


def _conv_tile(x_ref, w_ref, t, *, th, wo_pad, stride, kh, kw, cin):
    """Conv output tile for `th` output rows x `wo_pad` cols as ONE MXU matmul.

    x_ref: (1, hp, wp, cin) padded NHWC image of the current batch element (bf16).
    w_ref: (kh*kw*cin, cpad) combined-K weight matrix (bf16, Cout zero-padded).
    Returns an f32 value of shape (th*wo_pad, cpad); no Ref accumulation.
    """
    h0 = t * (th * stride)
    parts = [None] * (kh * kw)
    if stride == 1:
        for kx in range(kw):
            # One sublane-shifted window per kx (hoisted out of the ky loop); ky
            # offsets are cheap major-dim sub-slices of this value.
            win = x_ref[0, pl.ds(h0, th + kh - 1), pl.ds(kx, wo_pad), :]
            for ky in range(kh):
                parts[ky * kw + kx] = win[ky:ky + th].reshape(th * wo_pad, cin)
    else:
        # TODO(synk): stride>1 uses strided VMEM slices per tap; a wrapper-side column
        # de-interleave would give dense slices for the downsampling layers.
        for ky in range(kh):
            for kx in range(kw):
                sl = x_ref[0, pl.ds(h0 + ky, th, stride), pl.ds(kx, wo_pad, stride), :]
                parts[ky * kw + kx] = sl.reshape(th * wo_pad, cin)

    if len(parts) == 1:
        lhs = parts[0]
    else:
        # Concatenate at 32 bit when cin is lane-unaligned (robust unaligned-lane
        # concat), then drop back to the MXU input dtype for the combined-K dot.
        cat_dtype = x_ref.dtype if cin % 128 == 0 else jnp.float32
        lhs = jnp.concatenate([p.astype(cat_dtype) for p in parts], axis=-1)
        lhs = lhs.astype(x_ref.dtype)
    return jnp.dot(lhs, w_ref[...], preferred_element_type=jnp.float32)


def _conv_stats_kernel(x_ref, w_ref, sum_ref, sq_ref, *, th, wo_pad, stride, kh, kw,
                       cin, cpad, ho, wo):
    """Pass 1: conv tile (recomputed, never stored) + per-tile channel sum / sumsq."""
    t = pl.program_id(1)
    acc = _conv_tile(x_ref, w_ref, t, th=th, wo_pad=wo_pad, stride=stride,
                     kh=kh, kw=kw, cin=cin)
    mask = None
    if ho % th != 0:                     # rows of the last tile may spill past Ho
        mask = lax.broadcasted_iota(jnp.int32, (th, wo_pad), 0) < (ho - t * th)
    if wo_pad != wo:                     # padded columns never hold real pixels
        col_ok = lax.broadcasted_iota(jnp.int32, (th, wo_pad), 1) < wo
        mask = col_ok if mask is None else (mask & col_ok)
    if mask is not None:
        acc = acc * mask.reshape(th * wo_pad, 1).astype(jnp.float32)
    sum_ref[...] = jnp.sum(acc, axis=0, keepdims=True).reshape(1, 1, 1, cpad)
    sq_ref[...] = jnp.sum(acc * acc, axis=0, keepdims=True).reshape(1, 1, 1, cpad)


def _conv_bn_silu_kernel(x_ref, w_ref, scale_ref, shift_ref, o_ref, *, th, wo_pad,
                         stride, kh, kw, cin, cpad):
    """Pass 2: recompute conv tile, apply folded BN affine + SiLU, lane-dense store."""
    t = pl.program_id(1)
    acc = _conv_tile(x_ref, w_ref, t, th=th, wo_pad=wo_pad, stride=stride,
                     kh=kh, kw=kw, cin=cin)
    y = acc * scale_ref[...] + shift_ref[...]            # folded BN affine (f32)
    o_ref[...] = (y * jax.nn.sigmoid(y)).reshape(1, th * wo_pad, cpad).astype(o_ref.dtype)


def conv_bn_silu(x_nchw, weight, gamma, beta, *, stride, padding, eps=1e-5,
                 compute_dtype=jnp.bfloat16, out_dtype=jnp.bfloat16):
    """Equivalent of Conv(in,out,k,s).forward(x) for groups=1, bias=False (NCHW in/out)."""
    N, Cin, H, W = x_nchw.shape
    Cout, Cin_w, kh, kw = weight.shape
    assert Cin == Cin_w, "groups=1 only"   # TODO(synk): grouped conv not implemented
    Ho = (H + 2 * padding - kh) // stride + 1
    Wo = (W + 2 * padding - kw) // stride + 1
    K = kh * kw * Cin                      # combined contraction depth

    cpad = _round_up(Cout, 128)            # lane-dense channel dim
    wo_pad = _round_up(Wo, 16)             # sublane-aligned width (f32 & bf16 tiles)

    vmem_cap = _vmem_capacity_bytes()
    vmem_budget = max(32 * 2 ** 20, vmem_cap - 16 * 2 ** 20)   # headroom for Mosaic scratch
    target_pixels = 1024 if vmem_cap >= 100 * 2 ** 20 else 512  # bigger tiles on v5e/v6e
    th = max(1, min(Ho, target_pixels // wo_pad))

    def geom(th_):
        n_th_ = pl.cdiv(Ho, th_)
        ho_pad_ = n_th_ * th_
        hp_ = max(H + 2 * padding, (ho_pad_ - 1) * stride + kh)
        wp_ = max(W + 2 * padding, (wo_pad - 1) * stride + kw)
        return n_th_, ho_pad_, hp_, wp_

    def est_bytes(th_):
        _, _, hp_, wp_ = geom(th_)
        return (2 * _vmem_block_bytes((1, hp_, wp_, Cin), compute_dtype)      # x (dbl-buffered)
                + 1 * _vmem_block_bytes((K, cpad), compute_dtype)             # w (single)
                + 2 * _vmem_block_bytes((1, th_ * wo_pad, cpad), out_dtype)   # output
                + _vmem_block_bytes((th_ * wo_pad, K), compute_dtype)         # im2col value
                + _vmem_block_bytes((th_ * wo_pad, cpad), jnp.float32)        # f32 dot result
                + 8 * _vmem_block_bytes((1, 1, 1, cpad), jnp.float32))        # stats blocks

    while th > 1 and est_bytes(th) > 0.6 * vmem_budget:
        th = max(1, th // 2)
    n_th, ho_pad, hp, wp = geom(th)

    # Fused transpose -> pad -> cast (single XLA fusion pass over x; kernel reads NHWC).
    x = jnp.transpose(x_nchw, (0, 2, 3, 1))
    xp = jnp.pad(x, ((0, 0), (padding, hp - H - padding),
                     (padding, wp - W - padding), (0, 0))).astype(compute_dtype)

    # torch (Cout, Cin, kh, kw) -> combined-K matrix (kh*kw*Cin, cpad); row = (ky, kx, ci).
    w = jnp.transpose(weight, (2, 3, 1, 0)).reshape(K, Cout)
    w = jnp.pad(w, ((0, 0), (0, cpad - Cout))).astype(compute_dtype)

    grid = (N, n_th)
    # TODO(synk): for very large H on v7x (64 MiB VMEM), block x along output rows with
    # a halo (pl.Element / manual DMA) instead of keeping the whole image resident.
    x_spec = pl.BlockSpec((1, hp, wp, Cin), lambda n, t: (n, 0, 0, 0))
    w_index_map = lambda n, t: (0, 0)
    if _vmem_block_bytes((K, cpad), compute_dtype) >= (256 << 10):
        # Constant block: single-buffer to halve its VMEM reservation (matters for
        # big-channel layers, esp. on v7x). Tiny weights keep the default buffering.
        w_spec = pl.BlockSpec((K, cpad), w_index_map, pipeline_mode=pl.Buffered(1))
    else:
        w_spec = pl.BlockSpec((K, cpad), w_index_map)

    vmem_limit = int(min(vmem_budget, max(32 * 2 ** 20, 2 * est_bytes(th))))
    cparams = pltpu.CompilerParams(
        dimension_semantics=("parallel", "parallel"),
        vmem_limit_bytes=vmem_limit)

    kargs = dict(th=th, wo_pad=wo_pad, stride=stride, kh=kh, kw=kw, cin=Cin, cpad=cpad)

    # ---- pass 1: conv + per-tile BatchNorm batch statistics (no conv_out in HBM)
    ssum, ssq = pl.pallas_call(
        functools.partial(_conv_stats_kernel, ho=Ho, wo=Wo, **kargs),
        out_shape=(jax.ShapeDtypeStruct((N, n_th, 1, cpad), jnp.float32),
                   jax.ShapeDtypeStruct((N, n_th, 1, cpad), jnp.float32)),
        grid_spec=pltpu.PrefetchScalarGridSpec(
            num_scalar_prefetch=0, grid=grid,
            in_specs=[x_spec, w_spec],
            out_specs=(pl.BlockSpec((1, 1, 1, cpad), lambda n, t: (n, t, 0, 0)),
                       pl.BlockSpec((1, 1, 1, cpad), lambda n, t: (n, t, 0, 0)))),
        compiler_params=cparams,
    )(xp, w)

    # ---- fold BN (training-mode: batch mean, biased variance) into scale/shift
    # TODO(synk): E[x^2]-E[x]^2 in f32 can cancel for huge N*Ho*Wo; switch to
    # mean-shifted per-tile sums if tighter accuracy is ever required.
    P = N * Ho * Wo
    s = jnp.sum(ssum, axis=(0, 1, 2))[:Cout]
    q = jnp.sum(ssq, axis=(0, 1, 2))[:Cout]
    mean = s / P
    var = jnp.maximum(q / P - mean * mean, 0.0)
    scale = gamma.astype(jnp.float32) * lax.rsqrt(var + eps)
    shift = beta.astype(jnp.float32) - mean * scale
    scale_p = jnp.pad(scale, (0, cpad - Cout)).reshape(1, cpad)
    shift_p = jnp.pad(shift, (0, cpad - Cout)).reshape(1, cpad)

    # ---- pass 2: recompute conv tile, fused BN affine + SiLU, lane-dense bf16 output
    # TODO(synk): for large K (Cin*kh*kw >~ 512) a bf16 conv round-trip beats recompute.
    out = pl.pallas_call(
        functools.partial(_conv_bn_silu_kernel, **kargs),
        out_shape=jax.ShapeDtypeStruct((N, ho_pad * wo_pad, cpad), out_dtype),
        grid_spec=pltpu.PrefetchScalarGridSpec(
            num_scalar_prefetch=0, grid=grid,
            in_specs=[x_spec, w_spec,
                      pl.BlockSpec((1, cpad), lambda n, t: (0, 0)),
                      pl.BlockSpec((1, cpad), lambda n, t: (0, 0))],
            out_specs=pl.BlockSpec((1, th * wo_pad, cpad), lambda n, t: (n, t, 0))),
        compiler_params=cparams,
    )(xp, w, scale_p, shift_p)

    y = out.reshape(N, ho_pad, wo_pad, cpad)[:, :Ho, :Wo, :Cout]
    # NCHW to match the torch module; transpose runs on the narrow bf16 slab.
    return jnp.transpose(y, (0, 3, 1, 2)).astype(x_nchw.dtype)


def _reference(x, w, gamma, beta, stride, padding, eps=1e-5):
    conv = lax.conv_general_dilated(
        x, w, (stride, stride), [(padding, padding), (padding, padding)],
        dimension_numbers=("NCHW", "OIHW", "NCHW"))
    mean = conv.mean(axis=(0, 2, 3), keepdims=True)
    var = ((conv - mean) ** 2).mean(axis=(0, 2, 3), keepdims=True)
    y = (conv - mean) * lax.rsqrt(var + eps) * gamma.reshape(1, -1, 1, 1) \
        + beta.reshape(1, -1, 1, 1)
    return y * jax.nn.sigmoid(y)


if __name__ == "__main__":
    # Module config: Conv(in_channels=4, out_channels=8, kernel_size=3, stride=1)
    N, Cin, H, W = 2, 4, 16, 16
    Cout, k, stride = 8, 3, 1
    padding = k // 2

    key = jax.random.PRNGKey(0)
    kx_, kw_, kg_, kb_ = jax.random.split(key, 4)
    x = jax.random.normal(kx_, (N, Cin, H, W), dtype=jnp.float32)
    weight = 0.1 * jax.random.normal(kw_, (Cout, Cin, k, k), dtype=jnp.float32)
    gamma = 1.0 + 0.1 * jax.random.normal(kg_, (Cout,), dtype=jnp.float32)
    beta = 0.1 * jax.random.normal(kb_, (Cout,), dtype=jnp.float32)

    out = conv_bn_silu(x, weight, gamma, beta, stride=stride, padding=padding)
    out = jax.block_until_ready(out)

    ref = _reference(x, weight, gamma, beta, stride, padding)
    assert out.shape == ref.shape == (N, Cout, H, W)
    # bf16 MXU inputs + bf16 output store (per perf review) with f32 accumulation.
    assert jnp.allclose(out, ref, atol=2e-2, rtol=2e-2), "mismatch vs reference"

    print("KERNEL_OK")
</pallas_src>

<mosaic_0001>
module attributes {stable_mosaic.version = 11 : i64} {
  func.func @_conv_stats_kernel(%arg0: i32, %arg1: i32, %arg2: memref<1x18x18x4xbf16, #tpu.memory_space<vmem>>, %arg3: memref<36x128xbf16, #tpu.memory_space<vmem>>, %arg4: memref<1x1x1x128xf32, #tpu.memory_space<vmem>>, %arg5: memref<1x1x1x128xf32, #tpu.memory_space<vmem>>) attributes {dimension_semantics = [#tpu.dimension_semantics<parallel>, #tpu.dimension_semantics<parallel>], iteration_bounds = array<i64: 2, 1>, scalar_prefetch = 0 : i64, scratch_operands = 0 : i64, tpu.core_type = #tpu.core_type<tc>, window_params = [{transform_indices = @transform_0, window_bounds = array<i64: 1, 18, 18, 4>}, {pipeline_mode = #tpu.pipeline_mode<synchronous>, transform_indices = @transform_1, window_bounds = array<i64: 36, 128>}, {transform_indices = @transform_2, window_bounds = array<i64: 1, 1, 1, 128>}, {transform_indices = @transform_3, window_bounds = array<i64: 1, 1, 1, 128>}]} {
    %c16_i32 = arith.constant 16 : i32
    %0 = arith.muli %arg1, %c16_i32 : i32
    %c0 = arith.constant 0 : index
    %1 = arith.index_cast %0 : i32 to index
    %c0_0 = arith.constant 0 : index
    %c0_1 = arith.constant 0 : index
    %2 = vector.load %arg2[%c0, %1, %c0_0, %c0_1] : memref<1x18x18x4xbf16, #tpu.memory_space<vmem>>, vector<1x18x16x4xbf16>
    %3 = vector.shape_cast %2 : vector<1x18x16x4xbf16> to vector<18x16x4xbf16>
    %4 = vector.extract_strided_slice %3 {offsets = [0, 0, 0], sizes = [16, 16, 4], strides = [1, 1, 1]} : vector<18x16x4xbf16> to vector<16x16x4xbf16>
    %5 = vector.shape_cast %4 : vector<16x16x4xbf16> to vector<256x4xbf16>
    %6 = vector.extract_strided_slice %3 {offsets = [1, 0, 0], sizes = [16, 16, 4], strides = [1, 1, 1]} : vector<18x16x4xbf16> to vector<16x16x4xbf16>
    %7 = vector.shape_cast %6 : vector<16x16x4xbf16> to vector<256x4xbf16>
    %8 = vector.extract_strided_slice %3 {offsets = [2, 0, 0], sizes = [16, 16, 4], strides = [1, 1, 1]} : vector<18x16x4xbf16> to vector<16x16x4xbf16>
    %9 = vector.shape_cast %8 : vector<16x16x4xbf16> to vector<256x4xbf16>
    %c0_2 = arith.constant 0 : index
    %10 = arith.index_cast %0 : i32 to index
    %c1 = arith.constant 1 : index
    %c0_3 = arith.constant 0 : index
    %11 = vector.load %arg2[%c0_2, %10, %c1, %c0_3] : memref<1x18x18x4xbf16, #tpu.memory_space<vmem>>, vector<1x18x16x4xbf16>
    %12 = vector.shape_cast %11 : vector<1x18x16x4xbf16> to vector<18x16x4xbf16>
    %13 = vector.extract_strided_slice %12 {offsets = [0, 0, 0], sizes = [16, 16, 4], strides = [1, 1, 1]} : vector<18x16x4xbf16> to vector<16x16x4xbf16>
    %14 = vector.shape_cast %13 : vector<16x16x4xbf16> to vector<256x4xbf16>
    %15 = vector.extract_strided_slice %12 {offsets = [1, 0, 0], sizes = [16, 16, 4], strides = [1, 1, 1]} : vector<18x16x4xbf16> to vector<16x16x4xbf16>
    %16 = vector.shape_cast %15 : vector<16x16x4xbf16> to vector<256x4xbf16>
    %17 = vector.extract_strided_slice %12 {offsets = [2, 0, 0], sizes = [16, 16, 4], strides = [1, 1, 1]} : vector<18x16x4xbf16> to vector<16x16x4xbf16>
    %18 = vector.shape_cast %17 : vector<16x16x4xbf16> to vector<256x4xbf16>
    %c0_4 = arith.constant 0 : index
    %19 = arith.index_cast %0 : i32 to index
    %c2 = arith.constant 2 : index
    %c0_5 = arith.constant 0 : index
    %20 = vector.load %arg2[%c0_4, %19, %c2, %c0_5] : memref<1x18x18x4xbf16, #tpu.memory_space<vmem>>, vector<1x18x16x4xbf16>
    %21 = vector.shape_cast %20 : vector<1x18x16x4xbf16> to vector<18x16x4xbf16>
    %22 = vector.extract_strided_slice %21 {offsets = [0, 0, 0], sizes = [16, 16, 4], strides = [1, 1, 1]} : vector<18x16x4xbf16> to vector<16x16x4xbf16>
    %23 = vector.shape_cast %22 : vector<16x16x4xbf16> to vector<256x4xbf16>
    %24 = vector.extract_strided_slice %21 {offsets = [1, 0, 0], sizes = [16, 16, 4], strides = [1, 1, 1]} : vector<18x16x4xbf16> to vector<16x16x4xbf16>
    %25 = vector.shape_cast %24 : vector<16x16x4xbf16> to vector<256x4xbf16>
    %26 = vector.extract_strided_slice %21 {offsets = [2, 0, 0], sizes = [16, 16, 4], strides = [1, 1, 1]} : vector<18x16x4xbf16> to vector<16x16x4xbf16>
    %27 = vector.shape_cast %26 : vector<16x16x4xbf16> to vector<256x4xbf16>
    %28 = arith.extf %5 : vector<256x4xbf16> to vector<256x4xf32>
    %29 = arith.extf %14 : vector<256x4xbf16> to vector<256x4xf32>
    %30 = arith.extf %23 : vector<256x4xbf16> to vector<256x4xf32>
    %31 = arith.extf %7 : vector<256x4xbf16> to vector<256x4xf32>
    %32 = arith.extf %16 : vector<256x4xbf16> to vector<256x4xf32>
    %33 = arith.extf %25 : vector<256x4xbf16> to vector<256x4xf32>
    %34 = arith.extf %9 : vector<256x4xbf16> to vector<256x4xf32>
    %35 = arith.extf %18 : vector<256x4xbf16> to vector<256x4xf32>
    %36 = arith.extf %27 : vector<256x4xbf16> to vector<256x4xf32>
    %37 = tpu.concatenate %28, %29, %30, %31, %32, %33, %34, %35, %36 in 1 : vector<256x4xf32>, vector<256x4xf32>, vector<256x4xf32>, vector<256x4xf32>, vector<256x4xf32>, vector<256x4xf32>, vector<256x4xf32>, vector<256x4xf32>, vector<256x4xf32> -> vector<256x36xf32>
    %38 = arith.truncf %37 : vector<256x36xf32> to vector<256x36xbf16>
    %c0_6 = arith.constant 0 : index
    %c0_7 = arith.constant 0 : index
    %39 = vector.load %arg3[%c0_6, %c0_7] : memref<36x128xbf16, #tpu.memory_space<vmem>>, vector<36x128xbf16>
    %cst = arith.constant dense<0.000000e+00> : vector<256x128xf32>
    %40 = tpu.matmul %38, %39, %cst {dimension_numbers = #tpu.dot_dimension_numbers<[1], [0], [0], [1], [0, 0, 1, 1], [], []>} : vector<256x36xbf16>, vector<36x128xbf16>, vector<256x128xf32> -> vector<256x128xf32>
    %cst_8 = arith.constant dense<0.000000e+00> : vector<128xf32>
    %41 = vector.multi_reduction <add>, %40, %cst_8 [0] : vector<256x128xf32> to vector<128xf32>
    %42 = vector.shape_cast %41 : vector<128xf32> to vector<1x128xf32>
    %43 = vector.shape_cast %42 : vector<1x128xf32> to vector<1x1x1x128xf32>
    %c0_9 = arith.constant 0 : index
    %c0_10 = arith.constant 0 : index
    %c0_11 = arith.constant 0 : index
    %c0_12 = arith.constant 0 : index
    %44 = vector.load %arg4[%c0_9, %c0_10, %c0_11, %c0_12] : memref<1x1x1x128xf32, #tpu.memory_space<vmem>>, vector<1x1x1x128xf32>
    tpu.vector_store %arg4[%c0_9, %c0_10, %c0_11, %c0_12], %43 {strides = array<i32>} : memref<1x1x1x128xf32, #tpu.memory_space<vmem>>, vector<1x1x1x128xf32>,
    %45 = arith.mulf %40, %40 : vector<256x128xf32>
    %cst_13 = arith.constant dense<0.000000e+00> : vector<128xf32>
    %46 = vector.multi_reduction <add>, %45, %cst_13 [0] : vector<256x128xf32> to vector<128xf32>
    %47 = vector.shape_cast %46 : vector<128xf32> to vector<1x128xf32>
    %48 = vector.shape_cast %47 : vector<1x128xf32> to vector<1x1x1x128xf32>
    %c0_14 = arith.constant 0 : index
    %c0_15 = arith.constant 0 : index
    %c0_16 = arith.constant 0 : index
    %c0_17 = arith.constant 0 : index
    %49 = vector.load %arg5[%c0_14, %c0_15, %c0_16, %c0_17] : memref<1x1x1x128xf32, #tpu.memory_space<vmem>>, vector<1x1x1x128xf32>
    tpu.vector_store %arg5[%c0_14, %c0_15, %c0_16, %c0_17], %48 {strides = array<i32>} : memref<1x1x1x128xf32, #tpu.memory_space<vmem>>, vector<1x1x1x128xf32>,
    return
  }
  func.func @transform_0(%arg0: i32, %arg1: i32) -> (i32, i32, i32, i32) {
    %c0_i32 = arith.constant 0 : i32
    %c0_i32_0 = arith.constant 0 : i32
    %c0_i32_1 = arith.constant 0 : i32
    %c0_i32_2 = arith.constant 0 : i32
    return %arg0, %c0_i32, %c0_i32_0, %c0_i32_1 : i32, i32, i32, i32
  }
  func.func @transform_1(%arg0: i32, %arg1: i32) -> (i32, i32) {
    %c0_i32 = arith.constant 0 : i32
    %c0_i32_0 = arith.constant 0 : i32
    %c0_i32_1 = arith.constant 0 : i32
    return %c0_i32, %c0_i32_0 : i32, i32
  }
  func.func @transform_2(%arg0: i32, %arg1: i32) -> (i32, i32, i32, i32) {
    %c0_i32 = arith.constant 0 : i32
    %c0_i32_0 = arith.constant 0 : i32
    %c0_i32_1 = arith.constant 0 : i32
    return %arg0, %arg1, %c0_i32, %c0_i32_0 : i32, i32, i32, i32
  }
  func.func @transform_3(%arg0: i32, %arg1: i32) -> (i32, i32, i32, i32) {
    %c0_i32 = arith.constant 0 : i32
    %c0_i32_0 = arith.constant 0 : i32
    %c0_i32_1 = arith.constant 0 : i32
    return %arg0, %arg1, %c0_i32, %c0_i32_0 : i32, i32, i32, i32
  }
}

</mosaic_0001>

<bundles_post_ra>
// kernel: tpu_custom_call.1
= control target key start
LH: loop header
LB: loop body
LE: loop exit
PB: predicated region body
PF: predicated region fallthrough
CT: control target
= control target key end

     0   :  { %9 = vsyncpa [#allocation3], 0  ;;  %s5327_s0 = inlined_call_operand.vmem [shape: bf16[2,18,18,4], index: 0, kind: input, shape index: {}]   ;;  %s5328_s1 = inlined_call_operand.vmem [shape: bf16[36,128], index: 1, kind: input, shape index: {}]   ;;  %s5329_s2 = inlined_call_operand.hbm [shape: f32[2,1,1,128], index: 2, kind: output, shape index: {0}]   ;;  %s5330_s3 = inlined_call_operand.hbm [shape: f32[2,1,1,128], index: 3, kind: output, shape index: {1}]  }
   0x1   :  { %11 = vsyncpa [#allocation3 + $0x1], 0 }
   0x2   :  { %12 = vsyncpa [#allocation5], 0 }
   0x3   :  { %14 = vsyncpa [#allocation5 + $0x1], 0  ;;  %s3669_s12 = smov 0   ;;  %s3671_s13 = smov 0  }
   0x4   :  { %s3673_s14 = smov 0   ;;  %s3675_s15 = smov 0  }
   0x5   :  { %s3677_s16 = smov 0   ;;  %s3679_s17 = smov 0  }
   0x6 LB: > { %s2692_s18 = sadd.s32 4294967295, %s3637_s17   ;;  %s2693_s19 = sadd.s32 4294967294, %s3637_s17   ;;  %s3637_s17 = sphi %s3679_s17, %s20_s17   ;;  %s3633_s16 = sphi %s3677_s16, %s5556_s16   ;;  %s3629_s15 = sphi %s3675_s15, %s5555_s15   ;;  %s3625_s14 = sphi %s3673_s14, %s5554_s14   ;;  %s3621_s13 = sphi %s3671_s13, %s5553_s13   ;;  %s3617_s12 = sphi %s3669_s12, %s5552_s12  }
   0x7   : > { %s32_s20 = sadd.s32 1, %s3633_s16  ;;  %s88_s21 = sadd.s32 1, %s3625_s14 }
   0x8   : > { %p34_p0 = scmp.ge.s32.totalorder %s32_s20, 2  ;;  %p98_p1 = scmp.ne.s32.totalorder %s3625_s14, %s3621_s13 }
   0x9   : > { %p99_p2 = scmp.eq.s32.totalorder %s2692_s18, 1  ;;  %p104_p3 = scmp.ne.s32.totalorder %s3621_s13, %s3617_s12 }
   0xa   : > { %s5558_s20 = smov (%p34_p0, %s32_s20), 0  ;;  %p105_p5 = scmp.eq.s32.totalorder %s2693_s19, 1 }
   0xb   : > { %p3709_p4 = por %p99_p2, %p98_p1  ;;  %s83_s23 = ssub.s32 %s3633_s16, %s5558_s20 }
   0xc   : > { %p2696_p6 = scmp.ge.s32.totalorder %s3637_s17, 1  ;;  %p86_p7 = scmp.eq.s32.totalorder %s83_s23, 0 }
   0xd   : > { %p3716_p8 = por %p105_p5, %p104_p3  ;;  %p162_p9 = scmp.lt.s32.totalorder %s3637_s17, 3 }
   0xe   : > { %s3722_s25 = scalar_select %p86_p7, %s3625_s14, %s88_s21  }
   0xf   : > { %p163_p10 = pnand %p2696_p6, %p162_p9 }
  0x11   : > { %166 = sbr.rel (%p163_p10) target bundleno = 733 (0x2dd), region = 28 }
  0x18   : > { %p189_p11 = scmp.lt.s32.totalorder %s3629_s15, 1  ;;  %vm253_vm0 = vsmask.f32 3328  ;;  %vm254_vm1 = vsmask.f32 7440  ;;  %s3639_s4 = smov 4  }
  0x19   : > { %vm3757_vm2 = vmor %vm253_vm0, %vm254_vm1  ;;  %vm790_vm3 = vcmask 1042432   ;;  %vm791_vm4 = vcmask 1046532   ;;  %s3640_s5 = smov 8   ;;  %s3641_s6 = smov 12   ;;  %vm2292_vm6 = vcmask 1041408   ;;  %vm1943_vm7 = vcmask 31744  }
  0x1a   : > { %s190_s26 = scalar_select %p189_p11, %s3629_s15, 1  ;;  %vm4047_vm5 = vmor %vm790_vm3, %vm791_vm4  ;;  %vm1976_vm8 = vcmask 64512   ;;  %vm2009_vm9 = vcmask 97280   ;;  %vm2042_vm10 = vcmask 130048   ;;  %vm2075_vm11 = vcmask 162816  }
  0x1b   : > { %s3642_s9 = smov 16   ;;  %s3643_s18 = smov 20   ;;  %vm2108_vm12 = vcmask 195584   ;;  %vm2141_vm13 = vcmask 228352   ;;  %vm2174_vm14 = vcmask 261120   ;;  %vm2243_vm15 = vcmask 293888  }
  0x1c   : > { %s2804_s27 = smul.u32 216, %s190_s26  ;;  %s3644_s19 = smov 24  }
  0x1d   : > { %s3645_s26 = smov 28   ;;  %s5238_s28 = sand.u32 1, %s3621_s13  }
  0x1e   : > { %s3729_s30 = scalar_lea.vmem %s5327_s0, %s2804_s27  ;;  %s3646_s27 = smov 32  }
  0x1f   : > { %v203_v0 = vld [vmem:[%s3729_s30 + $0x18] sm:$0xf]  ;;  %v3733_v1 = vld [vmem:[%s3729_s30 + $0x1c] sm:$0xf]  ;;  %v3736_v2 = vld [vmem:[%s3729_s30 + $0x20] sm:$0x1] }
  0x20   : > { %v305_v3 = vshrl.u32 %v203_v0, 16  ;;  %v308_v4 = vshll.u32 %v203_v0, 16  ;;  %v314_v5 = vshll.u32 %v3733_v1, 16  ;;  %v318_v6 = vshrl.u32 %v3733_v1, 16  ;;  %v199_v7 = vld [vmem:[%s3729_s30] sm:$0xf] }
  0x21   : > { %v324_v8 = vshll.u32 %v3736_v2, 16  ;;  %v3743_v9 = vld [vmem:[%s3729_s30 + $0x4] sm:$0xf]  ;;  %v3746_v10 = vld [vmem:[%s3729_s30 + $0x8] sm:$0x1]  ;;  %v257_v11 = vshrl.u32 %v199_v7, 16 }
  0x22   : > { %v307_v12 = vrot.slane %v305_v3, 4  ;;  %v310_v13 = vrot.slane %v308_v4, 5  ;;  %v316_v14 = vrot.slane %v314_v5, 5  ;;  %v320_v15 = vrot.slane %v318_v6, 4  ;;  %v205_v16 = vld [vmem:[%s3729_s30 + $0x24] sm:$0xf] }
  0x23   : > { %v326_v17 = vrot.slane %v324_v8, 5  ;;  %v259_v18 = vrot.slane %v257_v11, 4  ;;  %v260_v19 = vshll.u32 %v199_v7, 16  ;;  %v266_v20 = vshll.u32 %v3743_v9, 16  ;;  %v3753_v25 = vld [vmem:[%s3729_s30 + $0x28] sm:$0xf] }
  0x24   : > { %v311_v21 = vor.u32 %v310_v13, %v307_v12  ;;  %v321_v22 = vor.u32 %v320_v15, %v316_v14  ;;  %v270_v23 = vshrl.u32 %v3743_v9, 16  ;;  %v276_v24 = vshll.u32 %v3746_v10, 16  ;;  %v3762_v36 = vld [vmem:[%s3729_s30 + $0x2c] sm:$0x1]  ;;  %v3779_v56 = vld [vmem:[%s3729_s30 + $0x10] sm:$0xf] }
  0x25   : > { %v262_v27 = vrot.slane %v260_v19, 5  ;;  %v268_v28 = vrot.slane %v266_v20, 5  ;;  %v329_v29 = vshrl.u32 %v205_v16, 16  ;;  %v332_v30 = vshll.u32 %v205_v16, 16  ;;  %v3771_v44 = vld [vmem:[%s3729_s30 + $0xc] sm:$0xf] }
  0x26   : > { %v312_v31 = vrot.slane %v311_v21, 4  ;;  %v322_v32 = vrot.slane %v321_v22, 4  ;;  %v272_v33 = vrot.slane %v270_v23, 4  ;;  %v278_v34 = vrot.slane %v276_v24, 5  ;;  %v3785_v62 = vld [vmem:[%s3729_s30 + $0x14] sm:$0x1] }
  0x27   : > { %v263_v35 = vor.u32 %v262_v27, %v259_v18  ;;  %v331_v37 = vrot.slane %v329_v29, 4  ;;  %v334_v38 = vrot.slane %v332_v30, 5  ;;  %v338_v39 = vshll.u32 %v3753_v25, 16  ;;  %v3788_v63 = vld [vmem:[%s3729_s30 + $0x3c] sm:$0xf]  ;;  %s2735_s29 = sshll.u32 %s3629_s15, 4 }
  0x28   : > { %v317_v40 = vsel %vm3757_vm2, %v312_v31, %v316_v14  ;;  %v327_v41 = vsel %vm3757_vm2, %v322_v32, %v326_v17  ;;  %v273_v42 = vor.u32 %v272_v33, %v268_v28  ;;  %v342_v43 = vshrl.u32 %v3753_v25, 16  ;;  %5414 = vst [vmem:[#allocation9_spill] sm:$0xff] %v3788_v63  ;;  %v3798_v12 = vld [vmem:[%s3729_s30 + $0x40] sm:$0xf]  ;;  %v3802_v16 = vld [vmem:[%s3729_s30 + $0x44] sm:$0x1]  ;;  %s5255_s11 = scalar_lea.hbm %s5330_s3, %s2735_s29 }
  0x29   : > { %v997_v45 = vunpack.c.l.bf16 %v317_v40  ;;  %v998_v46 = vunpack.c.l.bf16 %v327_v41  ;;  %v264_v47 = vrot.slane %v263_v35, 4  ;;  %v335_v48 = vor.u32 %v334_v38, %v331_v37  ;;  %5415 = vst [vmem:[#allocation10_spill] sm:$0xff] %v3798_v12  ;;  %v3809_v22 = vld [vmem:[%s3729_s30 + $0x30] sm:$0xf]  ;;  %v3818_v37 = vld [vmem:[%s3729_s30 + $0x34] sm:$0xf] }
  0x2a   : > { %v274_v49 = vrot.slane %v273_v42, 4  ;;  %v340_v50 = vrot.slane %v338_v39, 5  ;;  %v344_v51 = vrot.slane %v342_v43, 4  ;;  %v348_v52 = vshll.u32 %v3762_v36, 16  ;;  %5416 = vst [vmem:[#allocation11_spill] sm:$0xff] %v3809_v22  ;;  %5418 = vst [vmem:[#allocation13_spill] sm:$0xff] %v3818_v37 }
  0x2b   : > { %v3774_v53 = vpack.i.bf16 %v998_v46, %v997_v45  ;;  %v269_v54 = vsel %vm3757_vm2, %v264_v47, %v268_v28  ;;  %v336_v55 = vrot.slane %v335_v48, 4  ;;  %v281_v57 = vshrl.u32 %v3771_v44, 16  ;;  %v3822_v43 = vld [vmem:[%s3729_s30 + $0x38] sm:$0x1]  ;;  %s3647_s21 = smov [#allocation2]  }
  0x2c   : > { %v279_v58 = vsel %vm3757_vm2, %v274_v49, %v278_v34  ;;  %v993_v59 = vunpack.c.l.bf16 %v269_v54  ;;  %v345_v60 = vor.u32 %v344_v51, %v340_v50  ;;  %v350_v61 = vrot.slane %v348_v52, 5  ;;  %v3830_v49 = vld [vmem:[%s3729_s30 + $0x54] sm:$0xf]  ;;  %s3531_s23 = sshll.u32 %s3647_s21, 4  ;;  %s3532_s23 = int_to_ptr.vmem [resolvable:$false] %s3531_s23 }
  0x2d   : > { %5413 = vst [vmem:[#allocation8_spill] sm:$0xff] %v3774_v53  ;;  %2884 = vrot.lane.b32.xlu1 %v3774_v53, %s3639_s4  ;;  %v994_v0 = vunpack.c.l.bf16 %v279_v58  ;;  %v341_v3 = vsel %vm3757_vm2, %v336_v55, %v340_v50  ;;  %v283_v4 = vrot.slane %v281_v57, 4  ;;  %v284_v5 = vshll.u32 %v3771_v44, 16 }
  0x2e   : > { %v346_v6 = vrot.slane %v345_v60, 4  ;;  %v999_v7 = vunpack.c.l.bf16 %v341_v3  ;;  %v290_v8 = vshll.u32 %v3779_v56, 16  ;;  %v294_v11 = vshrl.u32 %v3779_v56, 16  ;;  %v3840_v3 = vld [vmem:[%s3729_s30 + $0x58] sm:$0xf] }
  0x2f   : > { %v2873_v13 = vpack.i.bf16 %v994_v0, %v993_v59  ;;  %v286_v14 = vrot.slane %v284_v5, 5  ;;  %v300_v15 = vshll.u32 %v3785_v62, 16  ;;  %v377_v17 = vshrl.u32 %v3788_v63, 16 }
  0x30   : > { %v351_v18 = vsel %vm3757_vm2, %v346_v6, %v350_v61  ;;  %v292_v19 = vrot.slane %v290_v8, 5  ;;  %v296_v20 = vrot.slane %v294_v11, 4  ;;  %v380_v21 = vshll.u32 %v3788_v63, 16  ;;  %v3846_v11 = vld [vmem:[%s3729_s30 + $0x5c] sm:$0x1] }
  0x31   : > { %2874 = vrot.lane.b32.xlu0 %v2873_v13, %s3639_s4  ;;  %v1000_v23 = vunpack.c.l.bf16 %v351_v18  ;;  %v287_v24 = vor.u32 %v286_v14, %v283_v4  ;;  %v302_v27 = vrot.slane %v300_v15, 5  ;;  %v379_v28 = vrot.slane %v377_v17, 4  ;;  %v3849_v13 = vld [vmem:[%s3729_s30 + $0x48] sm:$0xf] }
  0x32   : > { %v297_v29 = vor.u32 %v296_v20, %v292_v19  ;;  %v382_v30 = vrot.slane %v380_v21, 5  ;;  %v386_v31 = vshll.u32 %v3798_v12, 16  ;;  %v390_v32 = vshrl.u32 %v3798_v12, 16 }
  0x33   : > { %v3814_v33 = vpack.i.bf16 %v1000_v23, %v999_v7  ;;  %v288_v34 = vrot.slane %v287_v24, 4  ;;  %v396_v35 = vshll.u32 %v3802_v16, 16  ;;  %v353_v38 = vshrl.u32 %v3809_v22, 16 }
  0x34   : > { %v298_v39 = vrot.slane %v297_v29, 4  ;;  %v383_v40 = vor.u32 %v382_v30, %v379_v28  ;;  %v388_v41 = vrot.slane %v386_v31, 5  ;;  %v392_v42 = vrot.slane %v390_v32, 4  ;;  %v3860_v29 = vld [vmem:[%s3729_s30 + $0x4c] sm:$0xf] }
  0x35   : > { %5417 = vst [vmem:[#allocation12_spill] sm:$0xff] %v3814_v33  ;;  %2889 = vrot.lane.b32.xlu1 %v3814_v33, %s3639_s4  ;;  %v293_v45 = vsel %vm3757_vm2, %v288_v34, %v292_v19  ;;  %v398_v46 = vrot.slane %v396_v35, 5  ;;  %v355_v47 = vrot.slane %v353_v38, 4  ;;  %v356_v48 = vshll.u32 %v3809_v22, 16  ;;  %v3868_v38 = vld [vmem:[%s3729_s30 + $0x50] sm:$0x1] }
  0x36   : > { %v303_v50 = vsel %vm3757_vm2, %v298_v39, %v302_v27  ;;  %v995_v51 = vunpack.c.l.bf16 %v293_v45  ;;  %v384_v52 = vrot.slane %v383_v40, 4  ;;  %v393_v54 = vor.u32 %v392_v42, %v388_v41 }
  0x37   : > { %v996_v55 = vunpack.c.l.bf16 %v303_v50  ;;  %v358_v57 = vrot.slane %v356_v48, 5  ;;  %v362_v58 = vshll.u32 %v3818_v37, 16  ;;  %v366_v59 = vshrl.u32 %v3818_v37, 16  ;;  %v217_v50 = vld [vmem:[%s3729_s30 + $0x6c] sm:$0xf] }
  0x38   : > { %v389_v60 = vsel %vm3757_vm2, %v384_v52, %v388_v41  ;;  %v394_v61 = vrot.slane %v393_v54, 4  ;;  %v372_v0 = vshll.u32 %v3822_v43, 16  ;;  %v425_v4 = vshrl.u32 %v3830_v49, 16 }
  0x39   : > { %v3843_v5 = vpack.i.bf16 %v996_v55, %v995_v51  ;;  %v1003_v6 = vunpack.c.l.bf16 %v389_v60  ;;  %v359_v7 = vor.u32 %v358_v57, %v355_v47  ;;  %v364_v8 = vrot.slane %v362_v58, 5 }
  0x3a   : > { %v399_v14 = vsel %vm3757_vm2, %v394_v61, %v398_v46  ;;  %v368_v15 = vrot.slane %v366_v59, 4  ;;  %v374_v17 = vrot.slane %v372_v0, 5  ;;  %v427_v18 = vrot.slane %v425_v4, 4 }
  0x3b   : > { %2879 = vrot.lane.b32.xlu0 %v3843_v5, %s3639_s4  ;;  %v1004_v19 = vunpack.c.l.bf16 %v399_v14  ;;  %v360_v20 = vrot.slane %v359_v7, 4  ;;  %v428_v21 = vshll.u32 %v3830_v49, 16  ;;  %v434_v23 = vshll.u32 %v3840_v3, 16 }
  0x3c   : > { %v369_v24 = vor.u32 %v368_v15, %v364_v8  ;;  %v438_v27 = vshrl.u32 %v3840_v3, 16  ;;  %v444_v28 = vshll.u32 %v3846_v11, 16  ;;  %v401_v30 = vshrl.u32 %v3849_v13, 16 }
  0x3d   : > { %v3863_v31 = vpack.i.bf16 %v1004_v19, %v1003_v6  ;;  %v365_v32 = vsel %vm3757_vm2, %v360_v20, %v364_v8  ;;  %v430_v34 = vrot.slane %v428_v21, 5  ;;  %v436_v35 = vrot.slane %v434_v23, 5  ;;  %v3880_v6 = vld [vmem:[%s3729_s30 + $0x70] sm:$0xf]  ;;  %v215_v19 = vld [vmem:[%s3729_s30 + $0x60] sm:$0xf] }
  0x3e   : > { %v370_v39 = vrot.slane %v369_v24, 4  ;;  %v1001_v40 = vunpack.c.l.bf16 %v365_v32  ;;  %v440_v41 = vrot.slane %v438_v27, 4  ;;  %v446_v42 = vrot.slane %v444_v28, 5 }
  0x3f   : > { %5419 = vst [vmem:[#allocation14_spill] sm:$0xff] %v3863_v31  ;;  %2899 = vrot.lane.b32.xlu1 %v3863_v31, %s3639_s4  ;;  %v431_v45 = vor.u32 %v430_v34, %v427_v18  ;;  %v403_v46 = vrot.slane %v401_v30, 4  ;;  %v404_v47 = vshll.u32 %v3849_v13, 16  ;;  %v410_v48 = vshll.u32 %v3860_v29, 16  ;;  %v725_v31 = vld [vmem:[%s3729_s30 + $0xc] sm:$0xe] }
  0x40   : > { %v375_v51 = vsel %vm3757_vm2, %v370_v39, %v374_v17  ;;  %v441_v52 = vor.u32 %v440_v41, %v436_v35  ;;  %v414_v54 = vshrl.u32 %v3860_v29, 16  ;;  %v420_v55 = vshll.u32 %v3868_v38, 16  ;;  %v3887_v17 = vld [vmem:[%s3729_s30 + $0x74] sm:$0x1] }
  0x41   : > { %v1002_v57 = vunpack.c.l.bf16 %v375_v51  ;;  %v432_v58 = vrot.slane %v431_v45, 4  ;;  %v406_v59 = vrot.slane %v404_v47, 5  ;;  %v412_v60 = vrot.slane %v410_v48, 5  ;;  %v3902_v47 = vld [vmem:[%s3729_s30 + $0x64] sm:$0xf] }
  0x42   : > { %v442_v61 = vrot.slane %v441_v52, 4  ;;  %v416_v0 = vrot.slane %v414_v54, 4  ;;  %v422_v4 = vrot.slane %v420_v55, 5  ;;  %v473_v7 = vshrl.u32 %v217_v50, 16  ;;  %v3905_v48 = vld [vmem:[%s3729_s30 + $0x68] sm:$0x1] }
  0x43   : > { %v3882_v8 = vpack.i.bf16 %v1002_v57, %v1001_v40  ;;  %v437_v14 = vsel %vm3757_vm2, %v432_v58, %v436_v35  ;;  %v407_v15 = vor.u32 %v406_v59, %v403_v46  ;;  %v476_v18 = vshll.u32 %v217_v50, 16  ;;  %v221_v55 = vld [vmem:[%s3729_s30 + $0x84] sm:$0xf] }
  0x44   : > { %v447_v20 = vsel %vm3757_vm2, %v442_v61, %v446_v42  ;;  %v1007_v21 = vunpack.c.l.bf16 %v437_v14  ;;  %v417_v23 = vor.u32 %v416_v0, %v412_v60  ;;  %v475_v24 = vrot.slane %v473_v7, 4 }
  0x45   : > { %5420 = vst [vmem:[#allocation15_spill] sm:$0xff] %v3882_v8  ;;  %2894 = vrot.lane.b32.xlu0 %v3882_v8, %s3639_s4  ;;  %v1008_v27 = vunpack.c.l.bf16 %v447_v20  ;;  %v408_v28 = vrot.slane %v407_v15, 4  ;;  %v478_v30 = vrot.slane %v476_v18, 5  ;;  %v482_v32 = vshll.u32 %v3880_v6, 16  ;;  %v3920_v20 = vld [vmem:[%s3729_s30 + $0x88] sm:$0xf] }
  0x46   : > { %v418_v34 = vrot.slane %v417_v23, 4  ;;  %v486_v35 = vshrl.u32 %v3880_v6, 16  ;;  %v492_v39 = vshll.u32 %v3887_v17, 16  ;;  %v449_v40 = vshrl.u32 %v215_v19, 16 }
  0x47   : > { %v3897_v41 = vpack.i.bf16 %v1008_v27, %v1007_v21  ;;  %v413_v42 = vsel %vm3757_vm2, %v408_v28, %v412_v60  ;;  %v479_v45 = vor.u32 %v478_v30, %v475_v24  ;;  %v484_v46 = vrot.slane %v482_v32, 5  ;;  %v3923_v28 = vld [vmem:[%s3729_s30 + $0x8c] sm:$0x1] }
  0x48   : > { %v423_v50 = vsel %vm3757_vm2, %v418_v34, %v422_v4  ;;  %v1005_v51 = vunpack.c.l.bf16 %v413_v42  ;;  %v488_v52 = vrot.slane %v486_v35, 4  ;;  %v494_v54 = vrot.slane %v492_v39, 5  ;;  %v3928_v39 = vld [vmem:[%s3729_s30 + $0x78] sm:$0xf] }
  0x49   : > { %5421 = vst [vmem:[#allocation16_spill] sm:$0xff] %v3897_v41  ;;  %2909 = vrot.lane.b32.xlu1 %v3897_v41, %s3639_s4  ;;  %v1006_v57 = vunpack.c.l.bf16 %v423_v50  ;;  %v480_v58 = vrot.slane %v479_v45, 4  ;;  %v451_v59 = vrot.slane %v449_v40, 4  ;;  %v452_v60 = vshll.u32 %v215_v19, 16  ;;  %5423 = vst [vmem:[#allocation18_spill] sm:$0xff] %v3928_v39 }
  0x4a   : > { %v489_v61 = vor.u32 %v488_v52, %v484_v46  ;;  %v458_v0 = vshll.u32 %v3902_v47, 16  ;;  %v462_v7 = vshrl.u32 %v3902_v47, 16  ;;  %v468_v4 = vshll.u32 %v3905_v48, 16 }
  0x4b   : > { %v3915_v14 = vpack.i.bf16 %v1006_v57, %v1005_v51  ;;  %v485_v15 = vsel %vm3757_vm2, %v480_v58, %v484_v46  ;;  %v454_v18 = vrot.slane %v452_v60, 5  ;;  %v521_v21 = vshrl.u32 %v221_v55, 16  ;;  %v3936_v60 = vld [vmem:[%s3729_s30 + $0x7c] sm:$0xf] }
  0x4c   : > { %v490_v23 = vrot.slane %v489_v61, 4  ;;  %v1011_v24 = vunpack.c.l.bf16 %v485_v15  ;;  %v460_v19 = vrot.slane %v458_v0, 5  ;;  %v464_v27 = vrot.slane %v462_v7, 4  ;;  %v3944_v15 = vld [vmem:[%s3729_s30 + $0x80] sm:$0x1] }
  0x4d   : > { %5422 = vst [vmem:[#allocation17_spill] sm:$0xff] %v3915_v14  ;;  %2904 = vrot.lane.b32.xlu0 %v3915_v14, %s3639_s4  ;;  %v455_v30 = vor.u32 %v454_v18, %v451_v59  ;;  %v470_v32 = vrot.slane %v468_v4, 5  ;;  %v523_v34 = vrot.slane %v521_v21, 4  ;;  %v524_v35 = vshll.u32 %v221_v55, 16  ;;  %v3947_v18 = vld [vmem:[%s3729_s30 + $0x9c] sm:$0xf] }
  0x4e   : > { %v495_v40 = vsel %vm3757_vm2, %v490_v23, %v494_v54  ;;  %v465_v42 = vor.u32 %v464_v27, %v460_v19  ;;  %v530_v45 = vshll.u32 %v3920_v20, 16  ;;  %v534_v46 = vshrl.u32 %v3920_v20, 16  ;;  %5425 = vst [vmem:[#allocation20_spill] sm:$0xff] %v3947_v18 }
  0x4f   : > { %v1012_v50 = vunpack.c.l.bf16 %v495_v40  ;;  %v456_v51 = vrot.slane %v455_v30, 4  ;;  %v526_v52 = vrot.slane %v524_v35, 5  ;;  %v540_v57 = vshll.u32 %v3923_v28, 16 }
  0x50   : > { %v466_v58 = vrot.slane %v465_v42, 4  ;;  %v532_v59 = vrot.slane %v530_v45, 5  ;;  %v536_v55 = vrot.slane %v534_v46, 4  ;;  %v497_v61 = vshrl.u32 %v3928_v39, 16 }
  0x51   : > { %v3939_v54 = vpack.i.bf16 %v1012_v50, %v1011_v24  ;;  %v461_v0 = vsel %vm3757_vm2, %v456_v51, %v460_v19  ;;  %v527_v7 = vor.u32 %v526_v52, %v523_v34  ;;  %v542_v4 = vrot.slane %v540_v57, 5  ;;  %v3963_v57 = vld [vmem:[%s3729_s30 + $0xa0] sm:$0xf] }
  0x52   : > { %v471_v21 = vsel %vm3757_vm2, %v466_v58, %v470_v32  ;;  %v1009_v23 = vunpack.c.l.bf16 %v461_v0  ;;  %v537_v27 = vor.u32 %v536_v55, %v532_v59  ;;  %v499_v30 = vrot.slane %v497_v61, 4  ;;  %v3966_v58 = vld [vmem:[%s3729_s30 + $0xa4] sm:$0x1] }
  0x53   : > { %5424 = vst [vmem:[#allocation19_spill] sm:$0xff] %v3939_v54  ;;  %2919 = vrot.lane.b32.xlu1 %v3939_v54, %s3639_s4  ;;  %v1010_v24 = vunpack.c.l.bf16 %v471_v21  ;;  %v528_v35 = vrot.slane %v527_v7, 4  ;;  %v500_v19 = vshll.u32 %v3928_v39, 16  ;;  %v506_v34 = vshll.u32 %v3936_v60, 16  ;;  %v3971_v21 = vld [vmem:[%s3729_s30 + $0x90] sm:$0xf] }
  0x54   : > { %v538_v40 = vrot.slane %v537_v27, 4  ;;  %v510_v42 = vshrl.u32 %v3936_v60, 16  ;;  %v516_v32 = vshll.u32 %v3944_v15, 16  ;;  %v569_v45 = vshrl.u32 %v3947_v18, 16  ;;  %5427 = vst [vmem:[#allocation22_spill] sm:$0xff] %v3971_v21 }
  0x55   : > { %v3958_v46 = vpack.i.bf16 %v1010_v24, %v1009_v23  ;;  %v533_v50 = vsel %vm3757_vm2, %v528_v35, %v532_v59  ;;  %v502_v51 = vrot.slane %v500_v19, 5  ;;  %v508_v52 = vrot.slane %v506_v34, 5  ;;  %v3990_v54 = vld [vmem:[%s3729_s30 + $0x98] sm:$0x1] }
  0x56   : > { %v543_v55 = vsel %vm3757_vm2, %v538_v40, %v542_v4  ;;  %v1015_v61 = vunpack.c.l.bf16 %v533_v50  ;;  %v512_v0 = vrot.slane %v510_v42, 4  ;;  %v518_v7 = vrot.slane %v516_v32, 5  ;;  %v3982_v50 = vld [vmem:[%s3729_s30 + $0x94] sm:$0xf] }
  0x57   : > { %5426 = vst [vmem:[#allocation21_spill] sm:$0xff] %v3958_v46  ;;  %2914 = vrot.lane.b32.xlu0 %v3958_v46, %s3639_s4  ;;  %v1016_v23 = vunpack.c.l.bf16 %v543_v55  ;;  %v503_v59 = vor.u32 %v502_v51, %v499_v30  ;;  %v571_v27 = vrot.slane %v569_v45, 4  ;;  %v572_v24 = vshll.u32 %v3947_v18, 16 }
  0x58   : > { %v513_v35 = vor.u32 %v512_v0, %v508_v52  ;;  %v578_v19 = vshll.u32 %v3963_v57, 16  ;;  %v582_v4 = vshrl.u32 %v3963_v57, 16  ;;  %v588_v34 = vshll.u32 %v3966_v58, 16 }
  0x59   : > { %v3979_v40 = vpack.i.bf16 %v1016_v23, %v1015_v61  ;;  %v504_v42 = vrot.slane %v503_v59, 4  ;;  %v574_v32 = vrot.slane %v572_v24, 5  ;;  %v545_v30 = vshrl.u32 %v3971_v21, 16  ;;  %v3994_v59 = vld [vmem:[%s3729_s30 + $0xb4] sm:$0xf] }
  0x5a   : > { %v514_v45 = vrot.slane %v513_v35, 4  ;;  %v580_v51 = vrot.slane %v578_v19, 5  ;;  %v584_v55 = vrot.slane %v582_v4, 4  ;;  %v590_v0 = vrot.slane %v588_v34, 5  ;;  %5429 = vst [vmem:[#allocation24_spill] sm:$0xff] %v3994_v59 }
  0x5b   : > { %5428 = vst [vmem:[#allocation23_spill] sm:$0xff] %v3979_v40  ;;  %2929 = vrot.lane.b32.xlu1 %v3979_v40, %s3639_s4  ;;  %v509_v18 = vsel %vm3757_vm2, %v504_v42, %v508_v52  ;;  %v575_v39 = vor.u32 %v574_v32, %v571_v27  ;;  %v547_v61 = vrot.slane %v545_v30, 4  ;;  %v548_v23 = vshll.u32 %v3971_v21, 16  ;;  %v4002_v21 = vld [vmem:[%s3729_s30 + $0xb8] sm:$0xf] }
  0x5c   : > { %v519_v24 = vsel %vm3757_vm2, %v514_v45, %v518_v7  ;;  %v1013_v35 = vunpack.c.l.bf16 %v509_v18  ;;  %v585_v19 = vor.u32 %v584_v55, %v580_v51  ;;  %v554_v4 = vshll.u32 %v3982_v50, 16 }
  0x5d   : > { %v1014_v34 = vunpack.c.l.bf16 %v519_v24  ;;  %v576_v52 = vrot.slane %v575_v39, 4  ;;  %v550_v27 = vrot.slane %v548_v23, 5  ;;  %v558_v42 = vshrl.u32 %v3982_v50, 16  ;;  %v4010_v23 = vld [vmem:[%s3729_s30 + $0xbc] sm:$0x1] }
  0x5e   : > { %v586_v32 = vrot.slane %v585_v19, 4  ;;  %v556_v30 = vrot.slane %v554_v4, 5  ;;  %v564_v40 = vshll.u32 %v3990_v54, 16  ;;  %v617_v18 = vshrl.u32 %v3994_v59, 16  ;;  %v4013_v24 = vld [vmem:[%s3729_s30 + $0xa8] sm:$0xf] }
  0x5f   : > { %v4005_v7 = vpack.i.bf16 %v1014_v34, %v1013_v35  ;;  %v581_v45 = vsel %vm3757_vm2, %v576_v52, %v580_v51  ;;  %v551_v55 = vor.u32 %v550_v27, %v547_v61  ;;  %v560_v39 = vrot.slane %v558_v42, 4  ;;  %5431 = vst [vmem:[#allocation26_spill] sm:$0xff] %v4013_v24 }
  0x60   : > { %v591_v19 = vsel %vm3757_vm2, %v586_v32, %v590_v0  ;;  %v1019_v4 = vunpack.c.l.bf16 %v581_v45  ;;  %v566_v46 = vrot.slane %v564_v40, 5  ;;  %v619_v41 = vrot.slane %v617_v18, 4 }
  0x61   : > { %5430 = vst [vmem:[#allocation25_spill] sm:$0xff] %v4005_v7  ;;  %2924 = vrot.lane.b32.xlu0 %v4005_v7, %s3639_s4  ;;  %v1020_v35 = vunpack.c.l.bf16 %v591_v19  ;;  %v552_v34 = vrot.slane %v551_v55, 4  ;;  %v561_v51 = vor.u32 %v560_v39, %v556_v30  ;;  %v620_v61 = vshll.u32 %v3994_v59, 16  ;;  %v4029_v55 = vld [vmem:[%s3729_s30 + $0xac] sm:$0xf] }
  0x62   : > { %v626_v52 = vshll.u32 %v4002_v21, 16  ;;  %v630_v27 = vshrl.u32 %v4002_v21, 16  ;;  %v636_v0 = vshll.u32 %v4010_v23, 16  ;;  %v593_v42 = vshrl.u32 %v4013_v24, 16  ;;  %v4032_v39 = vld [vmem:[%s3729_s30 + $0xb0] sm:$0x1] }
  0x63   : > { %v4024_v40 = vpack.i.bf16 %v1020_v35, %v1019_v4  ;;  %v557_v32 = vsel %vm3757_vm2, %v552_v34, %v556_v30  ;;  %v562_v18 = vrot.slane %v561_v51, 4  ;;  %v622_v45 = vrot.slane %v620_v61, 5 }
  0x64   : > { %v1017_v19 = vunpack.c.l.bf16 %v557_v32  ;;  %v628_v7 = vrot.slane %v626_v52, 5  ;;  %v632_v59 = vrot.slane %v630_v27, 4  ;;  %v638_v14 = vrot.slane %v636_v0, 5 }
  0x65   : > { %5432 = vst [vmem:[#allocation27_spill] sm:$0xff] %v4024_v40  ;;  %2939 = vrot.lane.b32.xlu1 %v4024_v40, %s3639_s4  ;;  %v567_v4 = vsel %vm3757_vm2, %v562_v18, %v566_v46  ;;  %v623_v35 = vor.u32 %v622_v45, %v619_v41  ;;  %v595_v8 = vrot.slane %v593_v42, 4  ;;  %v596_v30 = vshll.u32 %v4013_v24, 16 }
  0x66   : > { %v1018_v34 = vunpack.c.l.bf16 %v567_v4  ;;  %v633_v51 = vor.u32 %v632_v59, %v628_v7  ;;  %v602_v61 = vshll.u32 %v4029_v55, 16  ;;  %v606_v52 = vshrl.u32 %v4029_v55, 16 }
  0x67   : > { %v624_v27 = vrot.slane %v623_v35, 4  ;;  %v598_v0 = vrot.slane %v596_v30, 5  ;;  %v612_v32 = vshll.u32 %v4032_v39, 16  ;;  %v2699_v33 = vrot.slane %v725_v31, 9  ;;  %v724_v31 = vld [vmem:[%s3729_s30] sm:$0xe] }
  0x68   : > { %v4043_v40 = vpack.i.bf16 %v1018_v34, %v1017_v19  ;;  %v634_v53 = vrot.slane %v633_v51, 4  ;;  %v604_v46 = vrot.slane %v602_v61, 5  ;;  %v608_v41 = vrot.slane %v606_v52, 4 }
  0x69   : > { %v5434_v42 = vmov 0  ;;  %v629_v59 = vsel %vm3757_vm2, %v624_v27, %v628_v7  ;;  %v599_v18 = vor.u32 %v598_v0, %v595_v8  ;;  %v614_v45 = vrot.slane %v612_v32, 5 }
  0x6a   : > { %5433 = vst [vmem:[#allocation28_spill] sm:$0xff] %v4043_v40  ;;  %v5435_v42 = vsel %vm4047_vm5, 4294967295, %v5434_v42  ;;  %v802_v4 = vrot.slane %v3779_v56, 5  ;;  %2934 = vrot.lane.b32.xlu0 %v4043_v40, %s3639_s4  ;;  %v639_v19 = vsel %vm3757_vm2, %v634_v53, %v638_v14  ;;  %v1023_v35 = vunpack.c.l.bf16 %v629_v59  ;;  %v727_v40 = vld [vmem:[%s3729_s30 + $0x24] sm:$0xe] }
  0x6b   : > { %5436 = vst [vmem:[#allocation29_spill] sm:$0xff] %v5435_v42  ;;  %v609_v30 = vor.u32 %v608_v41, %v604_v46  ;;  %v805_v34 = vrot.slane %v3785_v62, 5  ;;  %v1024_v51 = vunpack.c.l.bf16 %v639_v19  ;;  %v600_v61 = vrot.slane %v599_v18, 4  ;;  %v726_v41 = vld [vmem:[%s3729_s30 + $0x18] sm:$0xe] }
  0x6c   : > { %v803_v8 = vsel %vm4047_vm5, %v2699_v33, %v802_v4  ;;  %v804_v7 = vrot.slane %v802_v4, 4  ;;  %v2698_v0 = vrot.slane %v724_v31, 9  ;;  %v795_v32 = vrot.slane %v3743_v9, 5 }
  0x6d   : > { %v610_v52 = vrot.slane %v609_v30, 4  ;;  %v1027_v27 = vunpack.c.l.bf16 %v803_v8  ;;  %v4064_v24 = vpack.i.bf16 %v1024_v51, %v1023_v35  ;;  %v605_v53 = vsel %vm3757_vm2, %v600_v61, %v604_v46  ;;  %v729_v35 = vld [vmem:[%s3729_s30 + $0x3c] sm:$0xe] }
  0x6e   : > { %v806_v62 = vsel %vm4047_vm5, %v804_v7, %v805_v34  ;;  %v798_v14 = vrot.slane %v3746_v10, 5  ;;  %v1021_v59 = vunpack.c.l.bf16 %v605_v53  ;;  %v796_v9 = vsel %vm4047_vm5, %v2698_v0, %v795_v32 }
  0x6f   : > { %5437 = vst [vmem:[#allocation30_spill] sm:$0xff] %v4064_v24  ;;  %v615_v33 = vsel %vm3757_vm2, %v610_v52, %v614_v45  ;;  %v1028_v18 = vunpack.c.l.bf16 %v806_v62  ;;  %2949 = vrot.lane.b32.xlu1 %v4064_v24, %s3639_s4  ;;  %v797_v31 = vrot.slane %v795_v32, 4  ;;  %v1025_v46 = vunpack.c.l.bf16 %v796_v9  ;;  %v728_v32 = vld [vmem:[%s3729_s30 + $0x30] sm:$0xe] }
  0x70   : > { %v1022_v4 = vunpack.c.l.bf16 %v615_v33  ;;  %v2701_v19 = vrot.slane %v727_v40, 9  ;;  %v816_v10 = vrot.slane %v3753_v25, 5  ;;  %v819_v34 = vrot.slane %v3762_v36, 5  ;;  %v731_v33 = vld [vmem:[%s3729_s30 + $0x54] sm:$0xe] }
  0x71   : > { %v4079_v30 = vpack.i.bf16 %v1028_v18, %v1027_v27  ;;  %v2700_v45 = vrot.slane %v726_v41, 9  ;;  %v799_v61 = vsel %vm4047_vm5, %v797_v31, %v798_v14  ;;  %v809_v8 = vrot.slane %v3733_v1, 5 }
  0x72   : > { %v4083_v51 = vpack.i.bf16 %v1022_v4, %v1021_v59  ;;  %v812_v7 = vrot.slane %v3736_v2, 5  ;;  %v1026_v52 = vunpack.c.l.bf16 %v799_v61  ;;  %v817_v40 = vsel %vm4047_vm5, %v2701_v19, %v816_v10 }
  0x73   : > { %v818_v27 = vrot.slane %v816_v10, 4  ;;  %v2703_v25 = vrot.slane %v729_v35, 9  ;;  %2959 = vrot.lane.b32.xlu1 %v4079_v30, %s3640_s5  ;;  %v1031_v36 = vunpack.c.l.bf16 %v817_v40  ;;  %v810_v1 = vsel %vm4047_vm5, %v2700_v45, %v809_v8  ;;  %v730_v10 = vld [vmem:[%s3729_s30 + $0x48] sm:$0xe] }
  0x74   : > { %5438 = vst [vmem:[#allocation31_spill] sm:$0xff] %v4083_v51  ;;  %2944 = vrot.lane.b32.xlu0 %v4083_v51, %s3639_s4  ;;  %v811_v0 = vrot.slane %v809_v8, 4  ;;  %v830_v2 = vrot.slane %v3798_v12, 5  ;;  %v2953_v53 = vpack.i.bf16 %v1026_v52, %v1025_v46  ;;  %v1029_v14 = vunpack.c.l.bf16 %v810_v1 }
  0x75   : > { %v820_v62 = vsel %vm4047_vm5, %v818_v27, %v819_v34  ;;  %v833_v41 = vrot.slane %v3802_v16, 5  ;;  %v2702_v35 = vrot.slane %v728_v32, 9  ;;  %v823_v46 = vrot.slane %v3818_v37, 5  ;;  %v733_v27 = vld [vmem:[%s3729_s30 + $0x6c] sm:$0xe] }
  0x76   : > { %v1032_v59 = vunpack.c.l.bf16 %v820_v62  ;;  %v813_v18 = vsel %vm4047_vm5, %v811_v0, %v812_v7  ;;  %v831_v9 = vsel %vm4047_vm5, %v2703_v25, %v830_v2  ;;  %v832_v4 = vrot.slane %v830_v2, 4 }
  0x77   : > { %v1030_v31 = vunpack.c.l.bf16 %v813_v18  ;;  %v1035_v19 = vunpack.c.l.bf16 %v831_v9  ;;  %v826_v45 = vrot.slane %v3822_v43, 5  ;;  %v2705_v61 = vrot.slane %v731_v33, 9 }
  0x78   : > { %2954 = vrot.lane.b32.xlu0 %v2953_v53, %s3640_s5  ;;  %v4110_v34 = vpack.i.bf16 %v1032_v59, %v1031_v36  ;;  %v834_v16 = vsel %vm4047_vm5, %v832_v4, %v833_v41  ;;  %v824_v52 = vsel %vm4047_vm5, %v2702_v35, %v823_v46  ;;  %v825_v40 = vrot.slane %v823_v46, 4  ;;  %v732_v4 = vld [vmem:[%s3729_s30 + $0x60] sm:$0xe]  ;;  %v735_v46 = vld [vmem:[%s3729_s30 + $0x84] sm:$0xe] }
  0x79   : > { %v4115_v8 = vpack.i.bf16 %v1030_v31, %v1029_v14  ;;  %v1036_v7 = vunpack.c.l.bf16 %v834_v16  ;;  %v1033_v25 = vunpack.c.l.bf16 %v824_v52  ;;  %v844_v36 = vrot.slane %v3840_v3, 5 }
  0x7a   : > { %2969 = vrot.lane.b32.xlu1 %v4110_v34, %s3640_s5  ;;  %v847_v1 = vrot.slane %v3846_v11, 5  ;;  %v2704_v0 = vrot.slane %v730_v10, 9  ;;  %v827_v2 = vsel %vm4047_vm5, %v825_v40, %v826_v45  ;;  %v837_v32 = vrot.slane %v3860_v29, 5 }
  0x7b   : > { %v4124_v43 = vpack.i.bf16 %v1036_v7, %v1035_v19  ;;  %v840_v53 = vrot.slane %v3868_v38, 5  ;;  %v1034_v62 = vunpack.c.l.bf16 %v827_v2  ;;  %v845_v14 = vsel %vm4047_vm5, %v2705_v61, %v844_v36 }
  0x7c   : > { %2964 = vrot.lane.b32.xlu0 %v4115_v8, %s3640_s5  ;;  %v846_v41 = vrot.slane %v844_v36, 4  ;;  %v2707_v11 = vrot.slane %v733_v27, 9  ;;  %v1039_v33 = vunpack.c.l.bf16 %v845_v14  ;;  %v838_v59 = vsel %vm4047_vm5, %v2704_v0, %v837_v32  ;;  %v734_v27 = vld [vmem:[%s3729_s30 + $0x78] sm:$0xe] }
  0x7d   : > { %v839_v18 = vrot.slane %v837_v32, 4  ;;  %v858_v9 = vrot.slane %v3880_v6, 5  ;;  %v4140_v38 = vpack.i.bf16 %v1034_v62, %v1033_v25  ;;  %v1037_v19 = vunpack.c.l.bf16 %v838_v59  ;;  %v737_v62 = vld [vmem:[%s3729_s30 + $0x9c] sm:$0xe] }
  0x7e   : > { %2979 = vrot.lane.b32.xlu1 %v4124_v43, %s3640_s5  ;;  %v848_v31 = vsel %vm4047_vm5, %v846_v41, %v847_v1  ;;  %v861_v35 = vrot.slane %v3887_v17, 5  ;;  %v2706_v52 = vrot.slane %v732_v4, 9  ;;  %v851_v40 = vrot.slane %v3902_v47, 5 }
  0x7f   : > { %v1040_v10 = vunpack.c.l.bf16 %v848_v31  ;;  %v841_v16 = vsel %vm4047_vm5, %v839_v18, %v840_v53  ;;  %v859_v6 = vsel %vm4047_vm5, %v2707_v11, %v858_v9  ;;  %v860_v45 = vrot.slane %v858_v9, 4 }
  0x80   : > { %2974 = vrot.lane.b32.xlu0 %v4140_v38, %s3640_s5  ;;  %v1038_v61 = vunpack.c.l.bf16 %v841_v16  ;;  %v1043_v7 = vunpack.c.l.bf16 %v859_v6  ;;  %v854_v36 = vrot.slane %v3905_v48, 5  ;;  %v2709_v1 = vrot.slane %v735_v46, 9  ;;  %v736_v16 = vld [vmem:[%s3729_s30 + $0x90] sm:$0xe] }
  0x81   : > { %v4154_v17 = vpack.i.bf16 %v1040_v10, %v1039_v33  ;;  %v862_v25 = vsel %vm4047_vm5, %v860_v45, %v861_v35  ;;  %v852_v32 = vsel %vm4047_vm5, %v2706_v52, %v851_v40  ;;  %v853_v53 = vrot.slane %v851_v40, 4 }
  0x82   : > { %v4159_v0 = vpack.i.bf16 %v1038_v61, %v1037_v19  ;;  %v1044_v2 = vunpack.c.l.bf16 %v862_v25  ;;  %v1041_v14 = vunpack.c.l.bf16 %v852_v32  ;;  %v872_v41 = vrot.slane %v3920_v20, 5 }
  0x83   : > { %2989 = vrot.lane.b32.xlu1 %v4154_v17, %s3640_s5  ;;  %v875_v11 = vrot.slane %v3923_v28, 5  ;;  %v2708_v33 = vrot.slane %v734_v27, 9  ;;  %v855_v59 = vsel %vm4047_vm5, %v853_v53, %v854_v36  ;;  %v865_v18 = vrot.slane %v3936_v60, 5  ;;  %v738_v53 = vld [vmem:[%s3729_s30 + $0xa8] sm:$0xe] }
  0x84   : > { %2984 = vrot.lane.b32.xlu0 %v4159_v0, %s3640_s5  ;;  %v4170_v48 = vpack.i.bf16 %v1044_v2, %v1043_v7  ;;  %v868_v9 = vrot.slane %v3944_v15, 5  ;;  %v1042_v4 = vunpack.c.l.bf16 %v855_v59  ;;  %v873_v20 = vsel %vm4047_vm5, %v2709_v1, %v872_v41  ;;  %v739_v7 = vld [vmem:[%s3729_s30 + $0xb4] sm:$0xe] }
  0x85   : > { %v874_v31 = vrot.slane %v872_v41, 4  ;;  %v2711_v28 = vrot.slane %v737_v62, 9  ;;  %v1047_v19 = vunpack.c.l.bf16 %v873_v20  ;;  %v866_v35 = vsel %vm4047_vm5, %v2708_v33, %v865_v18 }
  0x86   : > { %v867_v46 = vrot.slane %v865_v18, 4  ;;  %v886_v10 = vrot.slane %v3963_v57, 5  ;;  %v4184_v6 = vpack.i.bf16 %v1042_v4, %v1041_v14  ;;  %v1045_v45 = vunpack.c.l.bf16 %v866_v35 }
  0x87   : > { %2999 = vrot.lane.b32.xlu1 %v4170_v48, %s3640_s5  ;;  %v876_v15 = vsel %vm4047_vm5, %v874_v31, %v875_v11  ;;  %v889_v61 = vrot.slane %v3966_v58, 5  ;;  %v2710_v2 = vrot.slane %v736_v16, 9  ;;  %v879_v32 = vrot.slane %v3982_v50, 5 }
  0x88   : > { %v1048_v52 = vunpack.c.l.bf16 %v876_v15  ;;  %v869_v40 = vsel %vm4047_vm5, %v867_v46, %v868_v9  ;;  %v887_v27 = vsel %vm4047_vm5, %v2711_v28, %v886_v10  ;;  %v888_v25 = vrot.slane %v886_v10, 4  ;;  %2994 = vrot.lane.b32.xlu0 %v4184_v6, %s3640_s5 }
  0x89   : > { %v1046_v36 = vunpack.c.l.bf16 %v869_v40  ;;  %v1051_v1 = vunpack.c.l.bf16 %v887_v27  ;;  %v882_v14 = vrot.slane %v3990_v54, 5  ;;  %v2713_v41 = vrot.slane %v739_v7, 9  ;;  %v4232_v27 = vld [vmem:[%s3729_s30 + $0x18] sm:$0xf] }
  0x8a   : > { %v4198_v62 = vpack.i.bf16 %v1048_v52, %v1047_v19  ;;  %v890_v58 = vsel %vm4047_vm5, %v888_v25, %v889_v61  ;;  %v880_v59 = vsel %vm4047_vm5, %v2710_v2, %v879_v32  ;;  %v881_v18 = vrot.slane %v879_v32, 4 }
  0x8b   : > { %v4203_v11 = vpack.i.bf16 %v1046_v36, %v1045_v45  ;;  %v1052_v33 = vunpack.c.l.bf16 %v890_v58  ;;  %v1049_v9 = vunpack.c.l.bf16 %v880_v59  ;;  %v900_v4 = vrot.slane %v4002_v21, 5  ;;  %v4236_v36 = vld [vmem:[%s3729_s30 + $0x1c] sm:$0xf] }
  0x8c   : > { %3009 = vrot.lane.b32.xlu1 %v4198_v62, %s3640_s5  ;;  %v903_v20 = vrot.slane %v4010_v23, 5  ;;  %v2712_v31 = vrot.slane %v738_v53, 9  ;;  %v883_v28 = vsel %vm4047_vm5, %v881_v18, %v882_v14  ;;  %v893_v19 = vrot.slane %v4029_v55, 5 }
  0x8d   : > { %3004 = vrot.lane.b32.xlu0 %v4203_v11, %s3640_s5  ;;  %v4213_v54 = vpack.i.bf16 %v1052_v33, %v1051_v1  ;;  %v896_v35 = vrot.slane %v4032_v39, 5  ;;  %v1050_v46 = vunpack.c.l.bf16 %v883_v28  ;;  %v901_v10 = vsel %vm4047_vm5, %v2713_v41, %v900_v4 }
  0x8e   : > { %v902_v23 = vrot.slane %v900_v4, 4  ;;  %v1055_v16 = vunpack.c.l.bf16 %v901_v10  ;;  %v894_v15 = vsel %vm4047_vm5, %v2712_v31, %v893_v19  ;;  %v895_v45 = vrot.slane %v893_v19, 4 }
  0x8f   : > { %5439 = vst [vmem:[#allocation32_spill] sm:$0xff] %v4213_v54  ;;  %v4225_v61 = vpack.i.bf16 %v1050_v46, %v1049_v9  ;;  %v1053_v52 = vunpack.c.l.bf16 %v894_v15  ;;  %v5373_v25 = vunpack.c.l.bf16 %v4232_v27  ;;  %v5374_v1 = vunpack.c.l.bf16 %v4236_v36  ;;  %v4262_v9 = vld [vmem:[%s3729_s30 + $0x24] sm:$0xf] }
  0x90   : > { %3019 = vrot.lane.b32.xlu1 %v4213_v54, %s3640_s5  ;;  %v904_v7 = vsel %vm4047_vm5, %v902_v23, %v903_v20  ;;  %v897_v40 = vsel %vm4047_vm5, %v895_v45, %v896_v35  ;;  %v5369_v32 = vunpack.c.l.bf16 %v3771_v44  ;;  %v5370_v53 = vunpack.c.l.bf16 %v3779_v56  ;;  %v4266_v20 = vld [vmem:[%s3729_s30 + $0x28] sm:$0xf] }
  0x91   : > { %v1056_v39 = vunpack.c.l.bf16 %v904_v7  ;;  %3014 = vrot.lane.b32.xlu0 %v4225_v61, %s3640_s5  ;;  %v1054_v2 = vunpack.c.l.bf16 %v897_v40  ;;  %v5365_v41 = vunpack.c.l.bf16 %v3809_v22  ;;  %v5366_v33 = vunpack.c.l.bf16 %v3818_v37  ;;  %v3514_v40 = vld [vmem:[%s5328_s1 + $0x8] sm:$0xff]   ;;  %v5457_v22 = vld [vmem:[#allocation19_spill] sm:$0xff] }
  0x92   : > { %v3038_v59 = vpack.i.bf16 %v5374_v1, %v5373_v25  ;;  %v3033_v18 = vpack.i.bf16 %v5370_v53, %v5369_v32  ;;  %v5371_v4 = vunpack.c.l.bf16 %v4262_v9  ;;  %v5372_v31 = vunpack.c.l.bf16 %v4266_v20  ;;  %v5451_v25 = vld [vmem:[#allocation21_spill] sm:$0xff] }
  0x93   : > { %v4243_v58 = vpack.i.bf16 %v1056_v39, %v1055_v16  ;;  %v4245_v14 = vpack.i.bf16 %v1054_v2, %v1053_v52  ;;  %v3048_v28 = vpack.i.bf16 %v5366_v33, %v5365_v41  ;;  %v5379_v19 = vunpack.c.l.bf16 %v3849_v13  ;;  %v3513_v39 = vld [vmem:[%s5328_s1] sm:$0xff]  }
  0x94   : > { %v5380_v35 = vunpack.c.l.bf16 %v3860_v29  ;;  %v3043_v46 = vpack.i.bf16 %v5372_v31, %v5371_v4  ;;  %v5367_v10 = vunpack.c.l.bf16 %v3788_v63  ;;  %v5368_v23 = vunpack.c.l.bf16 %v3798_v12  ;;  %2758 = vmatprep.subr.bf16.mxu0 %v3513_v39  ;;  %2796 = vmatprep.subr.bf16.mxu1 %v3513_v39  ;;  %v5442_v2 = vld [vmem:[#allocation8_spill] sm:$0xff] }
  0x95   : > { %5440 = vst [vmem:[#allocation33_spill] sm:$0xff] %v4243_v58  ;;  %5441 = vst [vmem:[#allocation34_spill] sm:$0xff] %v4245_v14  ;;  %3029 = vrot.lane.b32.xlu1 %v4243_v58, %s3640_s5  ;;  %3024 = vrot.lane.b32.xlu0 %v4245_v14, %s3640_s5  ;;  %v5381_v45 = vunpack.c.l.bf16 %v3830_v49  ;;  %v5382_v7 = vunpack.c.l.bf16 %v3840_v3  ;;  %v5376_v41 = vunpack.c.l.bf16 %v4029_v55  ;;  %v5378_v32 = vunpack.c.l.bf16 %v3902_v47  ;;  %v5450_v4 = vld [vmem:[#allocation16_spill] sm:$0xff]  ;;  %v5458_v58 = vld [vmem:[#allocation18_spill] sm:$0xff]  ;;  %s188_s5 = scalar_lea.vmem [#allocation4], %s5238_s28 }
  0x96   : > { %v4288_v16 = vpack.i.bf16 %v5380_v35, %v5379_v19  ;;  %v3053_v15 = vpack.i.bf16 %v5368_v23, %v5367_v10  ;;  %2759 = vmatpush3.bf16.msra.mxu0 %v3513_v39  ;;  %2799 = vmatpush3.bf16.msra.mxu1 %v3513_v39  ;;  %v4396_v23 = vld [vmem:[%s3729_s30 + $0x60] sm:$0xf]  ;;  %v3524_v63 = vld [vmem:[%s3729_s30 + $0x88] sm:$0xf]  ;;  %v5461_v14 = vld [vmem:[#allocation22_spill] sm:$0xff]  ;;  %v5463_v24 = vunpack.c.l.bf16 %v5458_v58  ;;  %v5465_v42 = vunpack.c.l.bf16 %v3840_v3 }
  0x97   : > { %v4304_v52 = vpack.i.bf16 %v5382_v7, %v5381_v45  ;;  %2760 = vmatprep.subr.bf16.mxu0 %v3514_v40  ;;  %2797 = vmatprep.subr.bf16.mxu1 %v3514_v40  ;;  %v984_v12 = vunpack.c.l.bf16 %v3524_v63  ;;  %v5464_v7 = vunpack.c.l.bf16 %v3936_v60  ;;  %v5467_v3 = vunpack.c.l.bf16 %v3860_v29 }
  0x99   : > { %3039 = vrot.lane.b32.xlu1 %v3038_v59, %s3641_s6  ;;  %3034 = vrot.lane.b32.xlu0 %v3033_v18, %s3641_s6 }
  0x9a   : > { %2761 = vmatpush3.bf16.msra.mxu0 %v3514_v40  ;;  %2800 = vmatpush3.bf16.msra.mxu1 %v3514_v40  ;;  %v5445_v40 = vld [vmem:[#allocation12_spill] sm:$0xff] }
  0x9d   : > { %3049 = vrot.lane.b32.xlu1 %v3048_v28, %s3641_s6  ;;  %3044 = vrot.lane.b32.xlu0 %v3043_v46, %s3641_s6 }
  0x9f   : > { %v4341_v33 = vpop.permute.xlu1 %2884 }
  0xa1   : > { %3059 = vrot.lane.b32.xlu1 %v4288_v16, %s3641_s6  ;;  %3054 = vrot.lane.b32.xlu0 %v3053_v15, %s3641_s6 }
  0xa5   : > { %3069 = vrot.lane.b32.xlu1 %v3843_v5, %s3642_s9  ;;  %3064 = vrot.lane.b32.xlu0 %v4304_v52, %s3641_s6  ;;  %v5443_v5 = vld [vmem:[#allocation26_spill] sm:$0xff] }
  0xa6   : > { %v5375_v18 = vunpack.c.l.bf16 %v5443_v5 }
  0xa8   : > { %v4332_v39 = vpack.i.bf16 %v5376_v41, %v5375_v18  ;;  %v4430_v18 = vld [vmem:[%s3729_s30 + $0x6c] sm:$0xf] }
  0xa9   : > { %3079 = vrot.lane.b32.xlu1 %v4079_v30, %s3643_s18  ;;  %3074 = vrot.lane.b32.xlu0 %v5442_v2, %s3642_s9  ;;  %v3515_v30 = vld [vmem:[%s5328_s1 + $0x10] ss:$0 sps:$4 sm:$0x33]   ;;  %v979_v41 = vunpack.c.l.bf16 %v4430_v18 }
  0xaa   : > { %5444 = vst [vmem:[#allocation8_spill] sm:$0xff] %v4332_v39  ;;  %2802 = vmatprep.subr.msk.bf16.mxu0 %vm2292_vm6, %v3515_v30  ;;  %2803 = vmatprep.subr.msk.bf16.mxu1 %vm2292_vm6, %v3515_v30 }
  0xad   : > { %3089 = vrot.lane.b32.xlu1 %v3038_v59, %s3644_s19  ;;  %3084 = vrot.lane.b32.xlu0 %v4115_v8, %s3643_s18  ;;  %v2294_v59 = vsel %vm2292_vm6, %v3515_v30, 0 }
  0xae   : > { %2763 = vmatpush3.bf16.msra.mxu0 %v2294_v59  ;;  %2801 = vmatpush3.bf16.msra.mxu1 %v2294_v59 }
  0xb1   : > { %3099 = vrot.lane.b32.xlu1 %v5442_v2, %s3645_s26  ;;  %3094 = vrot.lane.b32.xlu0 %v3043_v46, %s3644_s19  ;;  %v4347_v46 = vpop.permute.xlu0 %2874  ;;  %v5446_v2 = vld [vmem:[#allocation15_spill] sm:$0xff] }
  0xb5   : > { %3109 = vrot.lane.b32.xlu1 %v4115_v8, %s3646_s27  ;;  %3104 = vrot.lane.b32.xlu0 %v5445_v40, %s3645_s26  ;;  %v4353_v8 = vpop.permute.xlu1 %2889  ;;  %v4358_v30 = vpop.permute.xlu0 %2879 }
  0xb9   : > { %3119 = vrot.lane.b32.xlu1 %v5445_v40, %s3642_s9  ;;  %3114 = vrot.lane.b32.xlu0 %v4110_v34, %s3646_s27  ;;  %v4360_v59 = vpop.permute.xlu1 %2899 }
  0xbd   : > { %3129 = vrot.lane.b32.xlu1 %v4110_v34, %s3643_s18  ;;  %3124 = vrot.lane.b32.xlu0 %v5446_v2, %s3642_s9  ;;  %v4365_v34 = vpop.permute.xlu0 %2894  ;;  %v4371_v40 = vpop.permute.xlu1 %2909 }
  0xbe   : > { %5447 = vst [vmem:[#allocation26_spill] sm:$0xff] %v4365_v34  ;;  %v2911_v37 = vunpack.i.l.bf16 %v4371_v40 }
  0xc1   : > { %3139 = vrot.lane.b32.xlu1 %v3048_v28, %s3644_s19  ;;  %3134 = vrot.lane.b32.xlu0 %v4140_v38, %s3643_s18  ;;  %v5448_v28 = vld [vmem:[#allocation14_spill] sm:$0xff] }
  0xc5   : > { %3149 = vrot.lane.b32.xlu1 %v5446_v2, %s3645_s26  ;;  %3144 = vrot.lane.b32.xlu0 %v3053_v15, %s3644_s19  ;;  %v4377_v2 = vpop.permute.xlu0 %2904  ;;  %v4379_v15 = vpop.permute.xlu1 %2919 }
  0xc6   : > { %v2907_v51 = vunpack.i.h.bf16 %v4377_v2  ;;  %v2921_v34 = vunpack.i.l.bf16 %v4379_v15 }
  0xc9   : > { %3159 = vrot.lane.b32.xlu1 %v4140_v38, %s3646_s27  ;;  %3154 = vrot.lane.b32.xlu0 %v5448_v28, %s3645_s26  ;;  %v5449_v38 = vld [vmem:[#allocation17_spill] sm:$0xff]  ;;  %v4385_v10 = vpop.permute.xlu0 %2914 }
  0xcd   : > { %3169 = vrot.lane.b32.xlu1 %v5448_v28, %s3642_s9  ;;  %3164 = vrot.lane.b32.xlu0 %v4124_v43, %s3646_s27  ;;  %v4391_v28 = vpop.permute.xlu1 %2929 }
  0xd1   : > { %3179 = vrot.lane.b32.xlu1 %v4124_v43, %s3643_s18  ;;  %3174 = vrot.lane.b32.xlu0 %v5449_v38, %s3642_s9  ;;  %v5377_v43 = vunpack.c.l.bf16 %v4396_v23 }
  0xd5   : > { %3189 = vrot.lane.b32.xlu1 %v4288_v16, %s3644_s19  ;;  %3184 = vrot.lane.b32.xlu0 %v4159_v0, %s3643_s18  ;;  %v4402_v16 = vpop.permute.xlu0 %2924 }
  0xd7   : > { %v4404_v53 = vpop.permute.xlu1 %2939 }
  0xd9   : > { %3199 = vrot.lane.b32.xlu1 %v5449_v38, %s3645_s26  ;;  %3194 = vrot.lane.b32.xlu0 %v4304_v52, %s3644_s19  ;;  %v3218_v38 = vpack.i.bf16 %v5378_v32, %v5377_v43  ;;  %v3522_v43 = vld [vmem:[%s3729_s30 + $0x70] sm:$0xf] }
  0xda   : > { %v980_v32 = vunpack.c.l.bf16 %v3522_v43  ;;  %v4449_v43 = vld [vmem:[%s3729_s30 + $0x84] sm:$0xf] }
  0xdc   : > { %v4414_v31 = vpop.permute.xlu0 %2934  ;;  %v3248_v19 = vpack.i.bf16 %v980_v32, %v979_v41 }
  0xdd   : > { %3209 = vrot.lane.b32.xlu1 %v4159_v0, %s3646_s27  ;;  %3204 = vrot.lane.b32.xlu0 %v5450_v4, %s3645_s26 }
  0xe1   : > { %3219 = vrot.lane.b32.xlu1 %v3218_v38, %s3641_s6  ;;  %3214 = vrot.lane.b32.xlu0 %v4154_v17, %s3646_s27  ;;  %v4419_v52 = vpop.permute.xlu1 %2949 }
  0xe5   : > { %3229 = vrot.lane.b32.xlu1 %v5451_v25, %s3642_s9  ;;  %3224 = vrot.lane.b32.xlu0 %v5450_v4, %s3642_s9  ;;  %v4427_v1 = vpop.permute.xlu1 %2959 }
  0xe6   : > { %v4425_v0 = vpop.permute.xlu0 %2944  ;;  %5452 = vst [vmem:[#allocation12_spill] sm:$0xff] %v4427_v1  ;;  %v2922_v1 = vunpack.i.h.bf16 %v4379_v15  ;;  %v2916_v15 = vunpack.i.l.bf16 %v4385_v10 }
  0xe9   : > { %3239 = vrot.lane.b32.xlu1 %v4184_v6, %s3643_s18  ;;  %3234 = vrot.lane.b32.xlu0 %v4154_v17, %s3643_s18  ;;  %v2912_v17 = vunpack.i.h.bf16 %v4371_v40  ;;  %v2906_v40 = vunpack.i.l.bf16 %v4377_v2  ;;  %v5466_v2 = vunpack.c.l.bf16 %v3830_v49  ;;  %v5468_v49 = vunpack.c.l.bf16 %v3849_v13 }
  0xea   : > { %v4438_v4 = vpop.permute.xlu0 %2954 }
  0xeb   : > { %5453 = vst [vmem:[#allocation15_spill] sm:$0xff] %v4438_v4  ;;  %v1958_v63 = vsel %vm1943_vm7, %v5466_v2, %v2911_v37  ;;  %v1956_v37 = vsel %vm1943_vm7, %v5468_v49, %v2906_v40  ;;  %v2932_v40 = vunpack.i.h.bf16 %v4391_v28 }
  0xec   : > { %v4440_v35 = vpop.permute.xlu1 %2969 }
  0xed   : > { %5454 = vst [vmem:[#allocation14_spill] sm:$0xff] %v4440_v35  ;;  %3249 = vrot.lane.b32.xlu1 %v3248_v19, %s3644_s19  ;;  %3244 = vrot.lane.b32.xlu0 %v3218_v38, %s3644_s19  ;;  %v5462_v38 = vld [vmem:[#allocation24_spill] sm:$0xff]  ;;  %v4476_v35 = vpack.i.bf16 %v5464_v7, %v5463_v24 }
  0xee   : > { %v4444_v45 = vpop.permute.xlu0 %2964 }
  0xef   : > { %5455 = vst [vmem:[#allocation17_spill] sm:$0xff] %v4444_v45  ;;  %v5460_v45 = vld [vmem:[#allocation20_spill] sm:$0xff] }
  0xf0   : > { %v4446_v18 = vpop.permute.xlu1 %2979 }
  0xf1   : > { %5456 = vst [vmem:[#allocation16_spill] sm:$0xff] %v4446_v18  ;;  %3259 = vrot.lane.b32.xlu1 %v5457_v22, %s3645_s26  ;;  %3254 = vrot.lane.b32.xlu0 %v5451_v25, %s3645_s26 }
  0xf2   : > { %v4460_v18 = vpop.permute.xlu0 %2974 }
  0xf3   : > { %5459 = vst [vmem:[#allocation21_spill] sm:$0xff] %v4460_v18  ;;  %v1959_v18 = vsel %vm1943_vm7, %v5465_v42, %v2912_v17  ;;  %v1957_v42 = vsel %vm1943_vm7, %v5467_v3, %v2907_v51  ;;  %v5407_v51 = vunpack.c.l.bf16 %v4002_v21 }
  0xf5   : > { %3269 = vrot.lane.b32.xlu1 %v4170_v48, %s3646_s27  ;;  %v2990_v25 = vpop.permute.xlu1 %2989  ;;  %3264 = vrot.lane.b32.xlu0 %v4184_v6, %s3646_s27 }
  0xf6   : > { %v2992_v39 = vunpack.i.h.bf16 %v2990_v25  ;;  %v2991_v54 = vunpack.i.l.bf16 %v2990_v25  ;;  %v2985_v4 = vpop.permute.xlu0 %2984  ;;  %v2917_v25 = vunpack.i.h.bf16 %v4385_v10  ;;  %v1962_v10 = vsel %vm1943_vm7, %v979_v41, %v2921_v34 }
  0xf7   : > { %v2987_v24 = vunpack.i.h.bf16 %v2985_v4  ;;  %v2986_v7 = vunpack.i.l.bf16 %v2985_v4  ;;  %v2927_v41 = vunpack.i.h.bf16 %v4402_v16  ;;  %v2926_v34 = vunpack.i.l.bf16 %v4402_v16 }
  0xf8   : > { %v4495_v17 = vsel %vm1976_vm8, %v1959_v18, %v2992_v39  ;;  %v4498_v6 = vsel %vm1976_vm8, %v1958_v63, %v2991_v54  ;;  %v1963_v18 = vsel %vm1943_vm7, %v980_v32, %v2922_v1  ;;  %v2931_v63 = vunpack.i.l.bf16 %v4391_v28  ;;  %v5471_v28 = vld [vmem:[#allocation25_spill] sm:$0xff] }
  0xf9   : > { %v4503_v4 = vsel %vm1976_vm8, %v1956_v37, %v2986_v7  ;;  %v4506_v29 = vsel %vm1976_vm8, %v1957_v42, %v2987_v24  ;;  %3279 = vrot.lane.b32.xlu1 %v4476_v35, %s3641_s6  ;;  %v3000_v13 = vpop.permute.xlu1 %2999  ;;  %3274 = vrot.lane.b32.xlu0 %v3248_v19, %s3641_s6  ;;  %v5469_v19 = vunpack.c.l.bf16 %v3902_v47  ;;  %v5470_v1 = vunpack.c.l.bf16 %v4396_v23 }
  0xfa   : > { %v3002_v54 = vunpack.i.h.bf16 %v3000_v13  ;;  %v3001_v39 = vunpack.i.l.bf16 %v3000_v13  ;;  %v2995_v2 = vpop.permute.xlu0 %2994  ;;  %v5472_v23 = vunpack.c.l.bf16 %v4449_v43 }
  0xfb   : > { %v2997_v3 = vunpack.i.h.bf16 %v2995_v2  ;;  %v2996_v42 = vunpack.i.l.bf16 %v2995_v2  ;;  %v1961_v49 = vsel %vm1943_vm7, %v5469_v19, %v2917_v25  ;;  %v1960_v32 = vsel %vm1943_vm7, %v5470_v1, %v2916_v15 }
  0xfc   : > { %v4517_v24 = vsel %vm1976_vm8, %v1963_v18, %v3002_v54  ;;  %v4520_v7 = vsel %vm1976_vm8, %v1962_v10, %v3001_v39  ;;  %v4542_v25 = vpack.i.bf16 %v984_v12, %v5472_v23  ;;  %v1967_v15 = vsel %vm1943_vm7, %v984_v12, %v2932_v40 }
  0xfd   : > { %3289 = vrot.lane.b32.xlu1 %v5471_v28, %s3642_s9  ;;  %v4533_v37 = vsel %vm1976_vm8, %v1960_v32, %v2996_v42  ;;  %v4536_v13 = vsel %vm1976_vm8, %v1961_v49, %v2997_v3  ;;  %3284 = vrot.lane.b32.xlu0 %v5457_v22, %s3642_s9  ;;  %v5473_v16 = vmov %v5472_v23  ;;  %v2942_v2 = vunpack.i.h.bf16 %v4404_v53 }
  0xfe   : > { %v3010_v47 = vpop.permute.xlu1 %3009  ;;  %v1966_v54 = vsel %vm1943_vm7, %v5473_v16, %v2931_v63  ;;  %v2941_v3 = vunpack.i.l.bf16 %v4404_v53  ;;  %v5474_v19 = vunpack.c.l.bf16 %v3936_v60  ;;  %v5475_v1 = vunpack.c.l.bf16 %v5458_v58 }
  0xff   : > { %v3012_v39 = vunpack.i.h.bf16 %v3010_v47  ;;  %v3011_v18 = vunpack.i.l.bf16 %v3010_v47  ;;  %v3005_v10 = vpop.permute.xlu0 %3004  ;;  %v2937_v53 = vunpack.i.h.bf16 %v4414_v31  ;;  %v2936_v63 = vunpack.i.l.bf16 %v4414_v31 }
 0x100   : > { %v3007_v42 = vunpack.i.h.bf16 %v3005_v10  ;;  %v3006_v22 = vunpack.i.l.bf16 %v3005_v10  ;;  %v1965_v49 = vsel %vm1943_vm7, %v5474_v19, %v2927_v41  ;;  %v1964_v12 = vsel %vm1943_vm7, %v5475_v1, %v2926_v34 }
 0x101   : > { %v4557_v43 = vsel %vm1976_vm8, %v1967_v15, %v3012_v39  ;;  %v4560_v40 = vsel %vm1976_vm8, %v1966_v54, %v3011_v18  ;;  %3299 = vrot.lane.b32.xlu1 %v4203_v11, %s3643_s18  ;;  %3294 = vrot.lane.b32.xlu0 %v4170_v48, %s3643_s18  ;;  %v5480_v47 = vunpack.c.l.bf16 %v3963_v57  ;;  %v5481_v15 = vunpack.c.l.bf16 %v5460_v45 }
 0x102   : > { %5476 = vst [vmem:[#allocation19_spill] sm:$0xff] %v4557_v43  ;;  %5477 = vst [vmem:[#allocation18_spill] sm:$0xff] %v4560_v40  ;;  %v4567_v60 = vsel %vm1976_vm8, %v1964_v12, %v3006_v22  ;;  %v4570_v58 = vsel %vm1976_vm8, %v1965_v49, %v3007_v42  ;;  %v3020_v32 = vpop.permute.xlu1 %3019  ;;  %v2952_v16 = vunpack.i.h.bf16 %v4419_v52  ;;  %v2951_v54 = vunpack.i.l.bf16 %v4419_v52 }
 0x103   : > { %5478 = vst [vmem:[#allocation20_spill] sm:$0xff] %v4567_v60  ;;  %5479 = vst [vmem:[#allocation22_spill] sm:$0xff] %v4570_v58  ;;  %v3022_v41 = vunpack.i.h.bf16 %v3020_v32  ;;  %v3021_v34 = vunpack.i.l.bf16 %v3020_v32  ;;  %v1971_v23 = vsel %vm1943_vm7, %v5480_v47, %v2942_v2  ;;  %v1970_v31 = vsel %vm1943_vm7, %v5481_v15, %v2941_v3  ;;  %v3015_v39 = vpop.permute.xlu0 %3014  ;;  %v4591_v2 = vld [vmem:[%s3729_s30 + $0xc0] sm:$0xf] }
 0x104   : > { %v3017_v10 = vunpack.i.h.bf16 %v3015_v39  ;;  %v3016_v42 = vunpack.i.l.bf16 %v3015_v39  ;;  %v5484_v3 = vunpack.c.l.bf16 %v3982_v50  ;;  %v5485_v52 = vunpack.c.l.bf16 %v5461_v14 }
 0x105   : > { %v4583_v18 = vsel %vm1976_vm8, %v1971_v23, %v3022_v41  ;;  %v4586_v48 = vsel %vm1976_vm8, %v1970_v31, %v3021_v34  ;;  %3309 = vrot.lane.b32.xlu1 %v4542_v25, %s3644_s19  ;;  %v2947_v49 = vunpack.i.h.bf16 %v4425_v0  ;;  %v2946_v1 = vunpack.i.l.bf16 %v4425_v0  ;;  %3304 = vrot.lane.b32.xlu0 %v4476_v35, %s3644_s19  ;;  %v4610_v23 = vld [vmem:[%s3729_s30 + $0xc4] sm:$0xf] }
 0x106   : > { %5482 = vst [vmem:[#allocation24_spill] sm:$0xff] %v4583_v18  ;;  %5483 = vst [vmem:[#allocation25_spill] sm:$0xff] %v4586_v48  ;;  %v1969_v22 = vsel %vm1943_vm7, %v5484_v3, %v2937_v53  ;;  %v1968_v19 = vsel %vm1943_vm7, %v5485_v52, %v2936_v63  ;;  %v673_v63 = vshrl.u32 %v4591_v2, 16  ;;  %v676_v15 = vshll.u32 %v4591_v2, 16 }
 0x107   : > { %v4604_v12 = vsel %vm1976_vm8, %v1968_v19, %v3016_v42  ;;  %v4607_v32 = vsel %vm1976_vm8, %v1969_v22, %v3017_v10  ;;  %v3030_v41 = vpop.permute.xlu1 %3029  ;;  %v3025_v47 = vpop.permute.xlu0 %3024  ;;  %v1975_v35 = vsel %vm1943_vm7, %v5407_v51, %v2952_v16  ;;  %v5488_v0 = vunpack.c.l.bf16 %v5462_v38  ;;  %v5489_v42 = vld [vmem:[#allocation23_spill] sm:$0xff] }
 0x108   : > { %5486 = vst [vmem:[#allocation35_spill] sm:$0xff] %v4604_v12  ;;  %5487 = vst [vmem:[#allocation36_spill] sm:$0xff] %v4607_v32  ;;  %v3032_v34 = vunpack.i.h.bf16 %v3030_v41  ;;  %v3031_v53 = vunpack.i.l.bf16 %v3030_v41  ;;  %v3027_v39 = vunpack.i.h.bf16 %v3025_v47  ;;  %v3026_v10 = vunpack.i.l.bf16 %v3025_v47  ;;  %v5512_v32 = vld [vmem:[#allocation27_spill] sm:$0xff] }
 0x109   : > { %v1974_v31 = vsel %vm1943_vm7, %v5488_v0, %v2951_v54  ;;  %3319 = vrot.lane.b32.xlu1 %v5489_v42, %s3645_s26  ;;  %v5490_v3 = vunpack.c.l.bf16 %v4029_v55  ;;  %v5491_v52 = vunpack.c.l.bf16 %v5443_v5  ;;  %3314 = vrot.lane.b32.xlu0 %v5471_v28, %s3645_s26  ;;  %v682_v5 = vshll.u32 %v4610_v23, 16 }
 0x10a   : > { %v4629_v41 = vsel %vm1976_vm8, %v1975_v35, %v3032_v34  ;;  %v4632_v16 = vsel %vm1976_vm8, %v1974_v31, %v3031_v53  ;;  %v5496_v28 = vunpack.c.l.bf16 %v5461_v14  ;;  %v5497_v53 = vunpack.c.l.bf16 %v3982_v50  ;;  %v4667_v14 = vld [vmem:[%s3729_s30 + $0xc8] sm:$0x1] }
 0x10b   : > { %v1973_v22 = vsel %vm1943_vm7, %v5490_v3, %v2947_v49  ;;  %v1972_v19 = vsel %vm1943_vm7, %v5491_v52, %v2946_v1  ;;  %5492 = vst [vmem:[#allocation23_spill] sm:$0xff] %v4629_v41  ;;  %5493 = vst [vmem:[#allocation37_spill] sm:$0xff] %v4632_v16  ;;  %v4642_v49 = vpop.permute.xlu1 %3039  ;;  %v686_v1 = vshrl.u32 %v4610_v23, 16  ;;  %v4646_v34 = vpop.permute.xlu0 %3034  ;;  %v675_v35 = vrot.slane %v673_v63, 4 }
 0x10c   : > { %v4637_v54 = vsel %vm1976_vm8, %v1972_v19, %v3026_v10  ;;  %v4640_v55 = vsel %vm1976_vm8, %v1973_v22, %v3027_v39  ;;  %v4654_v47 = vpack.i.bf16 %v5497_v53, %v5496_v28  ;;  %v678_v0 = vrot.slane %v676_v15, 5  ;;  %v3525_v22 = vld [vmem:[%s3729_s30] sm:$0xf]  ;;  %v3526_v28 = vld [vmem:[%s3729_s30 + $0x4] sm:$0xf] }
 0x10d   : > { %5494 = vst [vmem:[#allocation38_spill] sm:$0xff] %v4637_v54  ;;  %5495 = vst [vmem:[#allocation39_spill] sm:$0xff] %v4640_v55  ;;  %3329 = vrot.lane.b32.xlu1 %v4198_v62, %s3646_s27  ;;  %3324 = vrot.lane.b32.xlu0 %v4203_v11, %s3646_s27  ;;  %v4660_v39 = vrot.slane %v682_v5, 5  ;;  %v688_v10 = vrot.slane %v686_v1, 4  ;;  %v2887_v3 = vunpack.i.h.bf16 %v4341_v33  ;;  %v961_v52 = vunpack.c.l.bf16 %v3525_v22 }
 0x10e   : > { %v2886_v50 = vunpack.i.l.bf16 %v4341_v33  ;;  %v962_v53 = vunpack.c.l.bf16 %v3526_v28  ;;  %v2877_v11 = vunpack.i.h.bf16 %v4347_v46  ;;  %v2876_v63 = vunpack.i.l.bf16 %v4347_v46 }
 0x10f   : > { %v4658_v31 = vpop.permute.xlu1 %3049  ;;  %v4664_v19 = vpop.permute.xlu0 %3044  ;;  %v2892_v15 = vunpack.i.h.bf16 %v4353_v8  ;;  %v679_v5 = vor.u32 %v678_v0, %v675_v35  ;;  %v2891_v1 = vunpack.i.l.bf16 %v4353_v8  ;;  %v689_v33 = vor.u32 %v688_v10, %v4660_v39  ;;  %v5500_v10 = vld [vmem:[#allocation28_spill] sm:$0xff] }
 0x110   : > { %v692_v28 = vshll.u32 %v4667_v14, 16  ;;  %v5498_v51 = vunpack.c.l.bf16 %v4236_v36  ;;  %v5499_v54 = vunpack.c.l.bf16 %v4232_v27  ;;  %v4696_v8 = vsel %vm1943_vm7, %v962_v53, %v2877_v11 }
 0x111   : > { %3339 = vrot.lane.b32.xlu1 %v4654_v47, %s3641_s6  ;;  %3334 = vrot.lane.b32.xlu0 %v4542_v25, %s3641_s6  ;;  %v2882_v35 = vunpack.i.h.bf16 %v4358_v30  ;;  %v2881_v0 = vunpack.i.l.bf16 %v4358_v30  ;;  %v4703_v36 = vsel %vm1943_vm7, %v961_v52, %v2876_v63  ;;  %v5503_v52 = vunpack.c.l.bf16 %v5460_v45  ;;  %v4740_v45 = vld [vmem:[%s3729_s30 + $0xcc] sm:$0xf] }
 0x112   : > { %v4686_v55 = vsel %vm1943_vm7, %v5498_v51, %v2887_v3  ;;  %v4693_v25 = vsel %vm1943_vm7, %v5499_v54, %v2886_v50  ;;  %v5501_v51 = vunpack.c.l.bf16 %v4266_v20  ;;  %v680_v54 = vrot.slane %v679_v5, 4 }
 0x113   : > { %v4679_v22 = vpop.permute.xlu1 %3059  ;;  %v4688_v46 = vpop.permute.xlu0 %3054  ;;  %v5502_v3 = vunpack.c.l.bf16 %v4262_v9  ;;  %v5504_v20 = vunpack.c.l.bf16 %v3963_v57  ;;  %v690_v11 = vrot.slane %v689_v33, 4  ;;  %v694_v63 = vrot.slane %v692_v28, 5 }
 0x114   : > { %v4708_v27 = vsel %vm1943_vm7, %v5501_v51, %v2892_v15  ;;  %v5506_v9 = vunpack.c.l.bf16 %v3771_v44  ;;  %v3037_v41 = vunpack.i.h.bf16 %v4646_v34 }
 0x115   : > { %3349 = vrot.lane.b32.xlu1 %v5500_v10, %s3642_s9  ;;  %3344 = vrot.lane.b32.xlu0 %v5489_v42, %s3642_s9  ;;  %v4715_v30 = vsel %vm1943_vm7, %v5502_v3, %v2891_v1  ;;  %v4723_v53 = vpack.i.bf16 %v5504_v20, %v5503_v52  ;;  %v5505_v42 = vunpack.c.l.bf16 %v3779_v56  ;;  %v685_v56 = vsel %vm3757_vm2, %v680_v54, %v4660_v39  ;;  %v5509_v20 = vld [vmem:[#allocation26_spill] sm:$0xff] }
 0x116   : > { %v1946_v1 = vsel %vm1943_vm7, %v5506_v9, %v2881_v0  ;;  %v5507_v54 = vunpack.c.l.bf16 %v5462_v38  ;;  %v699_v38 = vshrl.u32 %v4740_v45, 16  ;;  %v5510_v9 = vld [vmem:[#allocation12_spill] sm:$0xff] }
 0x117   : > { %v4717_v50 = vpop.permute.xlu1 %3069  ;;  %v3065_v15 = vpop.permute.xlu0 %3064  ;;  %v1947_v5 = vsel %vm1943_vm7, %v5505_v42, %v2882_v35  ;;  %v5408_v35 = vrot.slane %v4610_v23, 5  ;;  %v4773_v42 = vld [vmem:[%s3729_s30 + $0xd0] sm:$0xf] }
 0x118   : > { %v3067_v51 = vunpack.i.h.bf16 %v3065_v15  ;;  %v3066_v3 = vunpack.i.l.bf16 %v3065_v15  ;;  %v708_v16 = vshll.u32 %v4773_v42, 16  ;;  %v3072_v48 = vunpack.i.h.bf16 %v4717_v50 }
 0x119   : > { %3359 = vrot.lane.b32.xlu1 %v4225_v61, %s3643_s18  ;;  %3354 = vrot.lane.b32.xlu0 %v4198_v62, %s3643_s18  ;;  %v695_v62 = vsel %vm3757_vm2, %v690_v11, %v694_v63  ;;  %v4789_v11 = vrot.slane %v5408_v35, 4  ;;  %v4799_v63 = vrot.slane %v699_v38, 4  ;;  %v712_v35 = vshrl.u32 %v4773_v42, 16 }
 0x11a   : > { %v4744_v44 = vsel %vm2009_vm9, %v4503_v4, %v3066_v3  ;;  %v4748_v33 = vsel %vm2009_vm9, %v4506_v29, %v3067_v51  ;;  %v5508_v4 = vunpack.c.l.bf16 %v4002_v21  ;;  %v4765_v29 = vld [vmem:[%s3729_s30 + $0xc0] sm:$0xe]  ;;  %v2962_v21 = vunpack.i.h.bf16 %v5510_v9 }
 0x11b   : > { %v4750_v28 = vpop.permute.xlu1 %3079  ;;  %v4756_v0 = vpop.permute.xlu0 %3074  ;;  %v2961_v51 = vunpack.i.l.bf16 %v5510_v9  ;;  %v4780_v3 = vunpack.c.l.bf16 %v685_v56  ;;  %v3042_v9 = vunpack.i.h.bf16 %v4642_v49  ;;  %v3071_v18 = vunpack.i.l.bf16 %v4717_v50 }
 0x11c   : > { %v4762_v52 = vpack.i.bf16 %v5508_v4, %v5507_v54  ;;  %v4782_v54 = vunpack.c.l.bf16 %v695_v62  ;;  %v5511_v4 = vld [vmem:[#allocation15_spill] sm:$0xff]  ;;  %v702_v62 = vshll.u32 %v4740_v45, 16  ;;  %v3082_v58 = vunpack.i.h.bf16 %v4750_v28 }
 0x11d   : > { %3369 = vrot.lane.b32.xlu1 %v4723_v53, %s3644_s19  ;;  %3364 = vrot.lane.b32.xlu0 %v4654_v47, %s3644_s19  ;;  %v2957_v15 = vunpack.i.h.bf16 %v5511_v4  ;;  %v2956_v39 = vunpack.i.l.bf16 %v5511_v4  ;;  %v3041_v47 = vunpack.i.l.bf16 %v4642_v49  ;;  %v3036_v4 = vunpack.i.l.bf16 %v4646_v34 }
 0x11e   : > { %v1979_v12 = vsel %vm1976_vm8, %v1946_v1, %v2961_v51  ;;  %v1980_v49 = vsel %vm1976_vm8, %v1947_v5, %v2962_v21  ;;  %v3081_v1 = vunpack.i.l.bf16 %v4750_v28 }
 0x11f   : > { %v3090_v57 = vpop.permute.xlu1 %3089  ;;  %v3085_v56 = vpop.permute.xlu0 %3084  ;;  %v1977_v34 = vsel %vm1976_vm8, %v4703_v36, %v2956_v39  ;;  %v1978_v38 = vsel %vm1976_vm8, %v4696_v8, %v2957_v15  ;;  %v2012_v5 = vsel %vm2009_vm9, %v1979_v12, %v3041_v47  ;;  %v2013_v21 = vsel %vm2009_vm9, %v1980_v49, %v3042_v9  ;;  %v5513_v8 = vld [vmem:[#allocation32_spill] sm:$0xff] }
 0x120   : > { %v3092_v50 = vunpack.i.h.bf16 %v3090_v57  ;;  %v3091_v60 = vunpack.i.l.bf16 %v3090_v57  ;;  %v2011_v43 = vsel %vm2009_vm9, %v1978_v38, %v3037_v41  ;;  %v3077_v12 = vunpack.i.h.bf16 %v4756_v0 }
 0x121   : > { %3379 = vrot.lane.b32.xlu1 %v5512_v32, %s3645_s26  ;;  %3374 = vrot.lane.b32.xlu0 %v5500_v10, %s3645_s26  ;;  %v2010_v10 = vsel %vm2009_vm9, %v1977_v34, %v3036_v4  ;;  %v2044_v28 = vsel %vm2042_vm10, %v2011_v43, %v3072_v48  ;;  %v3076_v9 = vunpack.i.l.bf16 %v4756_v0  ;;  %v3087_v47 = vunpack.i.h.bf16 %v3085_v56  ;;  %v5514_v0 = vld [vmem:[#allocation8_spill] sm:$0xff] }
 0x122   : > { %v2043_v15 = vsel %vm2042_vm10, %v2010_v10, %v3071_v18  ;;  %v2077_v41 = vsel %vm2075_vm11, %v2044_v28, %v3082_v58  ;;  %v3086_v4 = vunpack.i.l.bf16 %v3085_v56 }
 0x123   : > { %v3100_v51 = vpop.permute.xlu1 %3099  ;;  %v3095_v40 = vpop.permute.xlu0 %3094  ;;  %v2076_v57 = vsel %vm2075_vm11, %v2043_v15, %v3081_v1  ;;  %v2110_v18 = vsel %vm2108_vm12, %v2077_v41, %v3092_v50  ;;  %v2045_v15 = vsel %vm2042_vm10, %v2012_v5, %v3076_v9  ;;  %v704_v41 = vrot.slane %v702_v62, 5 }
 0x124   : > { %v3102_v36 = vunpack.i.h.bf16 %v3100_v51  ;;  %v3101_v39 = vunpack.i.l.bf16 %v3100_v51  ;;  %v2109_v34 = vsel %vm2108_vm12, %v2076_v57, %v3091_v60  ;;  %v3097_v51 = vunpack.i.h.bf16 %v3095_v40 }
 0x125   : > { %3389 = vrot.lane.b32.xlu1 %v5513_v8, %s3646_s27  ;;  %3384 = vrot.lane.b32.xlu0 %v4225_v61, %s3646_s27  ;;  %v3096_v10 = vunpack.i.l.bf16 %v3095_v40  ;;  %v2046_v40 = vsel %vm2042_vm10, %v2013_v21, %v3077_v12  ;;  %v5515_v12 = vld [vmem:[#allocation31_spill] sm:$0xff] }
 0x126   : > { %v2142_v61 = vsel %vm2141_vm13, %v2109_v34, %v3101_v39  ;;  %v2143_v58 = vsel %vm2141_vm13, %v2110_v18, %v3102_v36  ;;  %v2078_v39 = vsel %vm2075_vm11, %v2045_v15, %v3086_v4  ;;  %v2079_v36 = vsel %vm2075_vm11, %v2046_v40, %v3087_v47  ;;  %v4845_v34 = vld [vmem:[%s3729_s30 + $0xd4] sm:$0x1] }
 0x127   : > { %v3110_v49 = vpop.permute.xlu1 %3109  ;;  %v3105_v48 = vpop.permute.xlu0 %3104  ;;  %v714_v18 = vrot.slane %v712_v35, 4  ;;  %v2112_v5 = vsel %vm2108_vm12, %v2079_v36, %v3097_v51  ;;  %v5517_v35 = vrot.slane %v4765_v29, 9  ;;  %v5519_v29 = vunpack.c.l.bf16 %v4591_v2  ;;  %v5521_v40 = vld [vmem:[#allocation34_spill] sm:$0xff] }
 0x128   : > { %v3112_v38 = vunpack.i.h.bf16 %v3110_v49  ;;  %v3111_v43 = vunpack.i.l.bf16 %v3110_v49  ;;  %v3107_v1 = vunpack.i.h.bf16 %v3105_v48  ;;  %v3106_v56 = vunpack.i.l.bf16 %v3105_v48 }
 0x129   : > { %3399 = vrot.lane.b32.xlu1 %v5514_v0, %s3641_s6  ;;  %3394 = vrot.lane.b32.xlu0 %v4723_v53, %s3641_s6  ;;  %v4847_v53 = vrot.slane %v708_v16, 5  ;;  %v5516_v16 = vrot.slane %v4610_v23, 5  ;;  %v945_v48 = vrot.slane %v4667_v14, 5 }
 0x12a   : > { %v2175_v60 = vsel %vm2174_vm14, %v2142_v61, %v3111_v43  ;;  %v2176_v50 = vsel %vm2174_vm14, %v2143_v58, %v3112_v38  ;;  %v2111_v38 = vsel %vm2108_vm12, %v2078_v39, %v3096_v10  ;;  %v2145_v47 = vsel %vm2141_vm13, %v2112_v5, %v3107_v1  ;;  %v5522_v39 = vld [vmem:[#allocation14_spill] sm:$0xff] }
 0x12b   : > { %v4840_v28 = vpop.permute.xlu1 %3119  ;;  %v2207_v57 = vpack.c.bf16 %v2176_v50, %v2175_v60  ;;  %v3115_v49 = vpop.permute.xlu0 %3114  ;;  %v2144_v62 = vsel %vm2141_vm13, %v2111_v38, %v3106_v56  ;;  %v4864_v43 = vsel %vm4047_vm5, %v5517_v35, %v5516_v16  ;;  %v705_v58 = vor.u32 %v704_v41, %v4799_v63 }
 0x12c   : > { %v3117_v9 = vunpack.i.h.bf16 %v3115_v49  ;;  %v3116_v21 = vunpack.i.l.bf16 %v3115_v49  ;;  %v718_v1 = vshll.u32 %v4845_v34, 16  ;;  %v5520_v50 = vunpack.c.l.bf16 %v4610_v23 }
 0x12d   : > { %3409 = vrot.lane.b32.xlu1 %v5515_v12, %s3642_s9  ;;  %2764 = vmatprep.mubr.msk.bf16.mxu0 %vm2243_vm15, %v2207_v57  ;;  %v715_v14 = vor.u32 %v714_v18, %v4847_v53  ;;  %v4885_v63 = vpack.i.bf16 %v4782_v54, %v4780_v3  ;;  %v4888_v57 = vld [vmem:[%s3729_s30 + $0xcc] sm:$0xe]  ;;  %v954_v41 = vrot.slane %v4773_v42, 5  ;;  %v2972_v36 = vunpack.i.h.bf16 %v5522_v39  ;;  %s182_s30 = scalar_lea.vmem [#allocation2], %s5238_s28 }
 0x12e   : > { %3404 = vrot.lane.b32.xlu0 %v5512_v32, %s3642_s9  ;;  %v2177_v51 = vsel %vm2174_vm14, %v2144_v62, %v3116_v21  ;;  %v2178_v10 = vsel %vm2174_vm14, %v2145_v47, %v3117_v9  ;;  %v4878_v15 = vpack.i.bf16 %v5520_v50, %v5519_v29  ;;  %v2971_v2 = vunpack.i.l.bf16 %v5522_v39  ;;  %v5523_v54 = vld [vmem:[#allocation17_spill] sm:$0xff]  ;;  %s2583_s4 = sshll.u32 %s182_s30, 4  ;;  %s5250_s4 = int_to_ptr.vmem [resolvable:$true] %s2583_s4 }
 0x12f   : > { %v3130_v61 = vpop.permute.xlu1 %3129  ;;  %v2208_v56 = vpack.c.bf16 %v2178_v10, %v2177_v51  ;;  %v4872_v60 = vpop.permute.xlu0 %3124  ;;  %v4899_v23 = vsel %vm4047_vm5, %v4789_v11, %v945_v48  ;;  %v1061_v3 = vunpack.c.l.bf16 %v4864_v43  ;;  %v2967_v49 = vunpack.i.h.bf16 %v5523_v54  ;;  %p3534_p1 = scmp.lt.s32.totalorder %s5250_s4, %s3532_s23 }
 0x130   : > { %v2966_v18 = vunpack.i.l.bf16 %v5523_v54  ;;  %v4904_v5 = vrot.slane %v705_v58, 4  ;;  %v4906_v9 = vrot.slane %v718_v1, 5  ;;  %v3051_v21 = vunpack.i.l.bf16 %v4658_v31 }
 0x131   : > { %3419 = vrot.lane.b32.xlu1 %v5521_v40, %s3643_s18  ;;  %2765 = vmatmul.mubr.msk.bf16.vlgmr.msra.gmra.mrb[0].mxu0 %vm2243_vm15, %v2208_v56  ;;  %v4910_v47 = vrot.slane %v715_v14, 4  ;;  %v2715_v11 = vrot.slane %v4888_v57, 9  ;;  %v3047_v16 = vunpack.i.h.bf16 %v4664_v19  ;;  %v3046_v35 = vunpack.i.l.bf16 %v4664_v19 }
 0x132   : > { %3414 = vrot.lane.b32.xlu0 %v5513_v8, %s3643_s18  ;;  %v3052_v8 = vunpack.i.h.bf16 %v4658_v31  ;;  %v4919_v48 = vrot.slane %v954_v41, 4  ;;  %v957_v51 = vrot.slane %v4845_v34, 5  ;;  %v1984_v31 = vsel %vm1976_vm8, %v4708_v27, %v2972_v36 }
 0x133   : > { %v3140_v38 = vpop.permute.xlu1 %3139  ;;  %v3135_v62 = vpop.permute.xlu0 %3134  ;;  %v1983_v10 = vsel %vm1976_vm8, %v4715_v30, %v2971_v2  ;;  %v3122_v58 = vunpack.i.h.bf16 %v4840_v28  ;;  %v3121_v1 = vunpack.i.l.bf16 %v4840_v28  ;;  %v1982_v19 = vsel %vm1976_vm8, %v4686_v55, %v2967_v49  ;;  %v5524_v55 = vld [vmem:[#allocation30_spill] sm:$0xff] }
 0x134   : > { %v1981_v56 = vsel %vm1976_vm8, %v4693_v25, %v2966_v18  ;;  %v3132_v29 = vunpack.i.h.bf16 %v3130_v61  ;;  %v3131_v50 = vunpack.i.l.bf16 %v3130_v61  ;;  %v2016_v27 = vsel %vm2009_vm9, %v1983_v10, %v3051_v21 }
 0x135   : > { %3429 = vrot.lane.b32.xlu1 %v4762_v52, %s3644_s19  ;;  %v2017_v30 = vsel %vm2009_vm9, %v1984_v31, %v3052_v8  ;;  %v3142_v39 = vunpack.i.h.bf16 %v3140_v38  ;;  %v3141_v36 = vunpack.i.l.bf16 %v3140_v38  ;;  %v2014_v28 = vsel %vm2009_vm9, %v1981_v56, %v3046_v35 }
 0x136   : > { %3424 = vrot.lane.b32.xlu0 %v5514_v0, %s3644_s19  ;;  %v2015_v0 = vsel %vm2009_vm9, %v1982_v19, %v3047_v16  ;;  %v2047_v25 = vsel %vm2042_vm10, %v2014_v28, %v3121_v1  ;;  %v3127_v49 = vunpack.i.h.bf16 %v4872_v60  ;;  %v3126_v18 = vunpack.i.l.bf16 %v4872_v60 }
 0x137   : > { %v3150_v14 = vpop.permute.xlu1 %3149  ;;  %v3145_v2 = vpop.permute.xlu0 %3144  ;;  %v2048_v61 = vsel %vm2042_vm10, %v2015_v0, %v3122_v58  ;;  %v2080_v38 = vsel %vm2075_vm11, %v2047_v25, %v3131_v50  ;;  %v3137_v21 = vunpack.i.h.bf16 %v3135_v62  ;;  %v3136_v16 = vunpack.i.l.bf16 %v3135_v62  ;;  %v5525_v50 = vld [vmem:[#allocation33_spill] sm:$0xff] }
 0x138   : > { %v3152_v54 = vunpack.i.h.bf16 %v3150_v14  ;;  %v3151_v32 = vunpack.i.l.bf16 %v3150_v14  ;;  %v2081_v8 = vsel %vm2075_vm11, %v2048_v61, %v3132_v29  ;;  %v2113_v31 = vsel %vm2108_vm12, %v2080_v38, %v3141_v36 }
 0x139   : > { %3439 = vrot.lane.b32.xlu1 %v5524_v55, %s3645_s26  ;;  %v2114_v10 = vsel %vm2108_vm12, %v2081_v8, %v3142_v39  ;;  %v3147_v14 = vunpack.i.h.bf16 %v3145_v2  ;;  %v2050_v39 = vsel %vm2042_vm10, %v2017_v30, %v3127_v49  ;;  %v711_v8 = vsel %vm3757_vm2, %v4904_v5, %v4847_v53 }
 0x13a   : > { %3434 = vrot.lane.b32.xlu0 %v5515_v12, %s3645_s26  ;;  %v2146_v56 = vsel %vm2141_vm13, %v2113_v31, %v3151_v32  ;;  %v2147_v60 = vsel %vm2141_vm13, %v2114_v10, %v3152_v54  ;;  %v3146_v12 = vunpack.i.l.bf16 %v3145_v2  ;;  %v2049_v32 = vsel %vm2042_vm10, %v2016_v27, %v3126_v18  ;;  %v5530_v10 = vld [vmem:[#allocation9_spill] sm:$0xff] }
 0x13b   : > { %v3160_v35 = vpop.permute.xlu1 %3159  ;;  %v3155_v19 = vpop.permute.xlu0 %3154  ;;  %v1062_v2 = vunpack.c.l.bf16 %v4899_v23  ;;  %v2082_v25 = vsel %vm2075_vm11, %v2049_v32, %v3136_v16  ;;  %v2083_v61 = vsel %vm2075_vm11, %v2050_v39, %v3137_v21  ;;  %v955_v26 = vsel %vm4047_vm5, %v2715_v11, %v954_v41 }
 0x13c   : > { %v3162_v1 = vunpack.i.h.bf16 %v3160_v35  ;;  %v3161_v58 = vunpack.i.l.bf16 %v3160_v35  ;;  %v3157_v28 = vunpack.i.h.bf16 %v3155_v19  ;;  %v3156_v36 = vunpack.i.l.bf16 %v3155_v19  ;;  %v5527_v35 = vld [vmem:[#allocation10_spill] sm:$0xff] }
 0x13d   : > { %3449 = vrot.lane.b32.xlu1 %v5525_v50, %s3646_s27  ;;  %v2115_v27 = vsel %vm2108_vm12, %v2082_v25, %v3146_v12  ;;  %v2116_v30 = vsel %vm2108_vm12, %v2083_v61, %v3147_v14  ;;  %v958_v5 = vsel %vm4047_vm5, %v4919_v48, %v957_v51  ;;  %v1064_v16 = vunpack.c.l.bf16 %v4773_v42 }
 0x13e   : > { %v2179_v29 = vsel %vm2174_vm14, %v2146_v56, %v3161_v58  ;;  %v2180_v62 = vsel %vm2174_vm14, %v2147_v60, %v3162_v1  ;;  %3444 = vrot.lane.b32.xlu0 %v5521_v40, %s3646_s27  ;;  %v721_v40 = vsel %vm3757_vm2, %v4910_v47, %v4906_v9  ;;  %v2148_v18 = vsel %vm2141_vm13, %v2115_v27, %v3156_v36  ;;  %v5533_v60 = vld [vmem:[#allocation13_spill] sm:$0xff]  ;;  %v5538_v36 = vld [vmem:[#allocation16_spill] sm:$0xff] }
 0x13f   : > { %v2209_v0 = vpack.c.bf16 %v2180_v62, %v2179_v29  ;;  %v4960_v54 = vpop.permute.xlu1 %3169  ;;  %v3165_v38 = vpop.permute.xlu0 %3164  ;;  %v2149_v53 = vsel %vm2141_vm13, %v2116_v30, %v3157_v28  ;;  %v5526_v57 = vunpack.i.h.bf16 %v4360_v59  ;;  %v5528_v31 = vunpack.c.l.bf16 %v5527_v35  ;;  %v5536_v29 = vld [vmem:[#allocation11_spill] sm:$0xff] }
 0x140   : > { %v3167_v23 = vunpack.i.h.bf16 %v3165_v38  ;;  %v3166_v49 = vunpack.i.l.bf16 %v3165_v38  ;;  %v5004_v4 = vunpack.c.l.bf16 %v711_v8  ;;  %v5006_v48 = vunpack.c.l.bf16 %v721_v40 }
 0x141   : > { %3459 = vrot.lane.b32.xlu1 %v4878_v15, %s3641_s6  ;;  %2768 = vmatprep.mubr.msk.bf16.mxu0 %vm2243_vm15, %v2209_v0  ;;  %v1955_v41 = vsel %vm1943_vm7, %v5528_v31, %v5526_v57  ;;  %v5529_v51 = vunpack.i.l.bf16 %v4360_v59  ;;  %v5531_v1 = vunpack.c.l.bf16 %v5530_v10  ;;  %v5017_v42 = vpack.i.bf16 %v1062_v2, %v1061_v3  ;;  %v5539_v3 = vld [vmem:[#allocation21_spill] sm:$0xff] }
 0x142   : > { %3454 = vrot.lane.b32.xlu0 %v4762_v52, %s3641_s6  ;;  %v2181_v9 = vsel %vm2174_vm14, %v2148_v18, %v3166_v49  ;;  %v2182_v47 = vsel %vm2174_vm14, %v2149_v53, %v3167_v23  ;;  %v1063_v52 = vunpack.c.l.bf16 %v4740_v45  ;;  %v1067_v58 = vunpack.c.l.bf16 %v955_v26  ;;  %s2597_s6 = sshll.u32 %s188_s5, 4  ;;  %s5257_s6 = int_to_ptr.vmem [resolvable:$true] %s2597_s6 }
 0x143   : > { %v3180_v21 = vpop.permute.xlu1 %3179  ;;  %v2210_v34 = vpack.c.bf16 %v2182_v47, %v2181_v9  ;;  %v5002_v11 = vpop.permute.xlu0 %3174  ;;  %v1954_v45 = vsel %vm1943_vm7, %v5531_v1, %v5529_v51  ;;  %v1068_v19 = vunpack.c.l.bf16 %v958_v5  ;;  %v5532_v56 = vunpack.i.h.bf16 %v5509_v20 }
 0x144   : > { %v5534_v14 = vunpack.c.l.bf16 %v5533_v60  ;;  %v5535_v59 = vunpack.i.l.bf16 %v5509_v20  ;;  %v5537_v62 = vunpack.c.l.bf16 %v5536_v29  ;;  %v2982_v39 = vunpack.i.h.bf16 %v5538_v36 }
 0x145   : > { %3469 = vrot.lane.b32.xlu1 %v4885_v63, %s3642_s9  ;;  %v2981_v43 = vunpack.i.l.bf16 %v5538_v36  ;;  %2769 = vmatmul.mubr.msk.bf16.gmra.mrb[4].mxu0 %vm2243_vm15, %v2210_v34  ;;  %v2977_v32 = vunpack.i.h.bf16 %v5539_v3  ;;  %v2976_v0 = vunpack.i.l.bf16 %v5539_v3  ;;  %v3488_v25 = vpack.i.bf16 %v1064_v16, %v1063_v52 }
 0x146   : > { %v1953_v12 = vsel %vm1943_vm7, %v5534_v14, %v5532_v56  ;;  %v1952_v28 = vsel %vm1943_vm7, %v5537_v62, %v5535_v59  ;;  %3464 = vrot.lane.b32.xlu0 %v5524_v55, %s3642_s9  ;;  %v3062_v20 = vunpack.i.h.bf16 %v4679_v22  ;;  %v3061_v61 = vunpack.i.l.bf16 %v4679_v22  ;;  %s5248_s9 = scalar_lea.hbm %s5329_s2, %s2735_s29 }
 0x147   : > { %v3190_v2 = vpop.permute.xlu1 %3189  ;;  %v3185_v38 = vpop.permute.xlu0 %3184  ;;  %v3498_v8 = vpack.i.bf16 %v5006_v48, %v5004_v4  ;;  %v3057_v40 = vunpack.i.h.bf16 %v4688_v46  ;;  %v3056_v55 = vunpack.i.l.bf16 %v4688_v46  ;;  %v3508_v27 = vpack.i.bf16 %v1068_v19, %v1067_v58 }
 0x148   : > { %v1988_v30 = vsel %vm1976_vm8, %v1955_v41, %v2982_v39  ;;  %v1987_v23 = vsel %vm1976_vm8, %v1954_v45, %v2981_v43  ;;  %v3172_v49 = vunpack.i.h.bf16 %v4960_v54  ;;  %v3171_v22 = vunpack.i.l.bf16 %v4960_v54 }
 0x149   : > { %3479 = vrot.lane.b32.xlu1 %v5017_v42, %s3643_s18  ;;  %v1985_v18 = vsel %vm1976_vm8, %v1952_v28, %v2976_v0  ;;  %v1986_v53 = vsel %vm1976_vm8, %v1953_v12, %v2977_v32  ;;  %v3182_v46 = vunpack.i.h.bf16 %v3180_v21  ;;  %v3181_v26 = vunpack.i.l.bf16 %v3180_v21 }
 0x14a   : > { %3474 = vrot.lane.b32.xlu0 %v5525_v50, %s3643_s18  ;;  %v2020_v9 = vsel %vm2009_vm9, %v1987_v23, %v3061_v61  ;;  %v2021_v47 = vsel %vm2009_vm9, %v1988_v30, %v3062_v20  ;;  %v3192_v52 = vunpack.i.h.bf16 %v3190_v2  ;;  %v3191_v16 = vunpack.i.l.bf16 %v3190_v2  ;;  %s2566_s18 = scalar_lea.sflag [#allocation3], %s5238_s28 }
 0x14b   : > { %v3200_v5 = vpop.permute.xlu1 %3199  ;;  %v3195_v57 = vpop.permute.xlu0 %3194  ;;  %v2018_v35 = vsel %vm2009_vm9, %v1985_v18, %v3056_v55  ;;  %v2019_v54 = vsel %vm2009_vm9, %v1986_v53, %v3057_v40  ;;  %v3177_v34 = vunpack.i.h.bf16 %v5002_v11  ;;  %v3176_v4 = vunpack.i.l.bf16 %v5002_v11 }
 0x14c   : > { %v3202_v31 = vunpack.i.h.bf16 %v3200_v5  ;;  %v3201_v50 = vunpack.i.l.bf16 %v3200_v5  ;;  %v2051_v41 = vsel %vm2042_vm10, %v2018_v35, %v3171_v22  ;;  %v2052_v21 = vsel %vm2042_vm10, %v2019_v54, %v3172_v49 }
 0x14d   : > { %3489 = vrot.lane.b32.xlu1 %v3488_v25, %s3644_s19  ;;  %v2084_v48 = vsel %vm2075_vm11, %v2051_v41, %v3181_v26  ;;  %v2085_v51 = vsel %vm2075_vm11, %v2052_v21, %v3182_v46  ;;  %v3187_v10 = vunpack.i.h.bf16 %v3185_v38  ;;  %v3186_v1 = vunpack.i.l.bf16 %v3185_v38 }
 0x14e   : > { %3484 = vrot.lane.b32.xlu0 %v4878_v15, %s3644_s19  ;;  %v2117_v58 = vsel %vm2108_vm12, %v2084_v48, %v3191_v16  ;;  %v2118_v19 = vsel %vm2108_vm12, %v2085_v51, %v3192_v52  ;;  %v3197_v59 = vunpack.i.h.bf16 %v3195_v57  ;;  %v3196_v15 = vunpack.i.l.bf16 %v3195_v57  ;;  %s3527_s19 = scalar_lea.vmem %s5250_s4, 16 }
 0x14f   : > { %v3210_v45 = vpop.permute.xlu1 %3209  ;;  %v3205_v14 = vpop.permute.xlu0 %3204  ;;  %v2150_v12 = vsel %vm2141_vm13, %v2117_v58, %v3201_v50  ;;  %v2151_v11 = vsel %vm2141_vm13, %v2118_v19, %v3202_v31  ;;  %v2054_v39 = vsel %vm2042_vm10, %v2021_v47, %v3177_v34  ;;  %v2053_v43 = vsel %vm2042_vm10, %v2020_v9, %v3176_v4  ;;  %p3528_p12 = scmp.ne.s32.totalorder %s5250_s4, %s3527_s19 }
 0x150   : > { %v3212_v56 = vunpack.i.h.bf16 %v3210_v45  ;;  %v3211_v60 = vunpack.i.l.bf16 %v3210_v45  ;;  %v3207_v28 = vunpack.i.h.bf16 %v3205_v14  ;;  %v3206_v36 = vunpack.i.l.bf16 %v3205_v14 }
 0x151   : > { %3499 = vrot.lane.b32.xlu1 %v3498_v8, %s3645_s26  ;;  %v2086_v0 = vsel %vm2075_vm11, %v2053_v43, %v3186_v1  ;;  %v2087_v2 = vsel %vm2075_vm11, %v2054_v39, %v3187_v10  ;;  %p3529_p13 = pnand %p3528_p12, %p3709_p4 }
 0x152   : > { %v2183_v29 = vsel %vm2174_vm14, %v2150_v12, %v3211_v60  ;;  %v2184_v62 = vsel %vm2174_vm14, %v2151_v11, %v3212_v56  ;;  %3494 = vrot.lane.b32.xlu0 %v4885_v63, %s3645_s26  ;;  %v2119_v20 = vsel %vm2108_vm12, %v2086_v0, %v3196_v15  ;;  %v2120_v61 = vsel %vm2108_vm12, %v2087_v2, %v3197_v59  ;;  %s3533_s26 = scalar_lea.vmem %s3532_s23, 32 }
 0x153   : > { %v2211_v3 = vpack.c.bf16 %v2184_v62, %v2183_v29  ;;  %v3220_v32 = vpop.permute.xlu1 %3219  ;;  %v3215_v25 = vpop.permute.xlu0 %3214  ;;  %v2152_v63 = vsel %vm2141_vm13, %v2119_v20, %v3206_v36  ;;  %v2153_v40 = vsel %vm2141_vm13, %v2120_v61, %v3207_v28  ;;  %p3530_p0 = pneg %p3529_p13  ;;  %p3535_p2 = scmp.lt.s32.totalorder %s3533_s26, %s3527_s19 }
 0x154   : > { %v3217_v38 = vunpack.i.h.bf16 %v3215_v25  ;;  %v3216_v8 = vunpack.i.l.bf16 %v3215_v25  ;;  %v3222_v53 = vunpack.i.h.bf16 %v3220_v32  ;;  %v3221_v46 = vunpack.i.l.bf16 %v3220_v32 }
 0x155   : > { %3509 = vrot.lane.b32.xlu1 %v3508_v27, %s3646_s27  ;;  %2772 = vmatprep.mubr.msk.bf16.mxu0 %vm2243_vm15, %v2211_v3  ;;  %p3536_p3 = por %p3535_p2, %p3534_p1 }
 0x156   : > { %3504 = vrot.lane.b32.xlu0 %v5017_v42, %s3646_s27  ;;  %v2185_v55 = vsel %vm2174_vm14, %v2152_v63, %v3216_v8  ;;  %v2186_v30 = vsel %vm2174_vm14, %v2153_v40, %v3217_v38  ;;  %v2025_v42 = vsel %vm2009_vm9, %v4495_v17, %v3222_v53  ;;  %v2024_v57 = vsel %vm2009_vm9, %v4498_v6, %v3221_v46 }
 0x157   : > { %v3230_v23 = vpop.permute.xlu1 %3229  ;;  %v2212_v49 = vpack.c.bf16 %v2186_v30, %v2185_v55  ;;  %v3225_v22 = vpop.permute.xlu0 %3224  ;;  %p3537_p5 = pnand %p3536_p3, %p3530_p0 }
 0x158   : > { %v3232_v5 = vunpack.i.h.bf16 %v3230_v23  ;;  %v3231_v9 = vunpack.i.l.bf16 %v3230_v23  ;;  %v3227_v52 = vunpack.i.h.bf16 %v3225_v22  ;;  %v3226_v16 = vunpack.i.l.bf16 %v3225_v22 }
 0x159   : > { %2773 = vmatmul.mubr.msk.bf16.gmra.mrb[8].mxu0 %vm2243_vm15, %v2212_v49 }
 0x15a   : > { %v2057_v4 = vsel %vm2042_vm10, %v2024_v57, %v3231_v9  ;;  %v2058_v48 = vsel %vm2042_vm10, %v2025_v42, %v3232_v5  ;;  %v2055_v17 = vsel %vm2042_vm10, %v4744_v44, %v3226_v16  ;;  %v2056_v6 = vsel %vm2042_vm10, %v4748_v33, %v3227_v52 }
 0x15b   : > { %v3240_v18 = vpop.permute.xlu1 %3239  ;;  %v3235_v27 = vpop.permute.xlu0 %3234 }
 0x15c   : > { %v3242_v35 = vunpack.i.h.bf16 %v3240_v18  ;;  %v3241_v54 = vunpack.i.l.bf16 %v3240_v18  ;;  %v3237_v31 = vunpack.i.h.bf16 %v3235_v27  ;;  %v3236_v50 = vunpack.i.l.bf16 %v3235_v27 }
 0x15e   : > { %v2090_v19 = vsel %vm2075_vm11, %v2057_v4, %v3241_v54  ;;  %v2091_v56 = vsel %vm2075_vm11, %v2058_v48, %v3242_v35  ;;  %v2088_v12 = vsel %vm2075_vm11, %v2055_v17, %v3236_v50  ;;  %v2089_v11 = vsel %vm2075_vm11, %v2056_v6, %v3237_v31 }
 0x15f   : > { %v3250_v26 = vpop.permute.xlu1 %3249  ;;  %v3245_v47 = vpop.permute.xlu0 %3244 }
 0x160   : > { %v3252_v41 = vunpack.i.h.bf16 %v3250_v26  ;;  %v3251_v21 = vunpack.i.l.bf16 %v3250_v26  ;;  %v3247_v51 = vunpack.i.h.bf16 %v3245_v47  ;;  %v3246_v10 = vunpack.i.l.bf16 %v3245_v47 }
 0x162   : > { %v2123_v59 = vsel %vm2108_vm12, %v2090_v19, %v3251_v21  ;;  %v2124_v15 = vsel %vm2108_vm12, %v2091_v56, %v3252_v41  ;;  %v2121_v29 = vsel %vm2108_vm12, %v2088_v12, %v3246_v10  ;;  %v2122_v33 = vsel %vm2108_vm12, %v2089_v11, %v3247_v51 }
 0x163   : > { %v3260_v34 = vpop.permute.xlu1 %3259  ;;  %v3255_v1 = vpop.permute.xlu0 %3254 }
 0x164   : > { %v3262_v45 = vunpack.i.h.bf16 %v3260_v34  ;;  %v3261_v58 = vunpack.i.l.bf16 %v3260_v34  ;;  %v3257_v60 = vunpack.i.h.bf16 %v3255_v1  ;;  %v3256_v14 = vunpack.i.l.bf16 %v3255_v1 }
 0x166   : > { %v2156_v39 = vsel %vm2141_vm13, %v2123_v59, %v3261_v58  ;;  %v2157_v43 = vsel %vm2141_vm13, %v2124_v15, %v3262_v45  ;;  %v2154_v0 = vsel %vm2141_vm13, %v2121_v29, %v3256_v14  ;;  %v2155_v2 = vsel %vm2141_vm13, %v2122_v33, %v3257_v60 }
 0x167   : > { %v3270_v44 = vpop.permute.xlu1 %3269  ;;  %v3265_v36 = vpop.permute.xlu0 %3264 }
 0x168   : > { %v3272_v62 = vunpack.i.h.bf16 %v3270_v44  ;;  %v3271_v28 = vunpack.i.l.bf16 %v3270_v44  ;;  %v3267_v3 = vunpack.i.h.bf16 %v3265_v36  ;;  %v3266_v32 = vunpack.i.l.bf16 %v3265_v36 }
 0x16a   : > { %v2189_v25 = vsel %vm2174_vm14, %v2156_v39, %v3271_v28  ;;  %v2190_v20 = vsel %vm2174_vm14, %v2157_v43, %v3272_v62  ;;  %v2187_v38 = vsel %vm2174_vm14, %v2154_v0, %v3266_v32  ;;  %v2188_v8 = vsel %vm2174_vm14, %v2155_v2, %v3267_v3 }
 0x16b   : > { %v2214_v61 = vpack.c.bf16 %v2190_v20, %v2189_v25  ;;  %v3280_v63 = vpop.permute.xlu1 %3279  ;;  %v2213_v40 = vpack.c.bf16 %v2188_v8, %v2187_v38  ;;  %v3275_v55 = vpop.permute.xlu0 %3274 }
 0x16c   : > { %v3282_v18 = vunpack.i.h.bf16 %v3280_v63  ;;  %v3281_v27 = vunpack.i.l.bf16 %v3280_v63  ;;  %v3277_v53 = vunpack.i.h.bf16 %v3275_v55  ;;  %v3276_v46 = vunpack.i.l.bf16 %v3275_v55 }
 0x16d   : > { %2776 = vmatprep.mubr.msk.bf16.mxu0 %vm2243_vm15, %v2213_v40 }
 0x16e   : > { %2777 = vmatmul.mubr.msk.bf16.gmra.mrb[12].mxu0 %vm2243_vm15, %v2214_v61  ;;  %v2029_v52 = vsel %vm2009_vm9, %v4517_v24, %v3282_v18  ;;  %v2028_v16 = vsel %vm2009_vm9, %v4520_v7, %v3281_v27  ;;  %v2026_v35 = vsel %vm2009_vm9, %v4533_v37, %v3276_v46  ;;  %v2027_v54 = vsel %vm2009_vm9, %v4536_v13, %v3277_v53 }
 0x16f   : > { %v3290_v30 = vpop.permute.xlu1 %3289  ;;  %v3285_v23 = vpop.permute.xlu0 %3284 }
 0x170   : > { %v3292_v5 = vunpack.i.h.bf16 %v3290_v30  ;;  %v3291_v9 = vunpack.i.l.bf16 %v3290_v30  ;;  %v3287_v42 = vunpack.i.h.bf16 %v3285_v23  ;;  %v3286_v57 = vunpack.i.l.bf16 %v3285_v23 }
 0x172   : > { %v2061_v24 = vsel %vm2042_vm10, %v2028_v16, %v3291_v9  ;;  %v2062_v51 = vsel %vm2042_vm10, %v2029_v52, %v3292_v5  ;;  %v2059_v17 = vsel %vm2042_vm10, %v2026_v35, %v3286_v57  ;;  %v2060_v37 = vsel %vm2042_vm10, %v2027_v54, %v3287_v42  ;;  %v5540_v9 = vld [vmem:[#allocation19_spill] sm:$0xff]  ;;  %v5541_v52 = vld [vmem:[#allocation18_spill] sm:$0xff]  ;;  %v5542_v35 = vld [vmem:[#allocation20_spill] sm:$0xff] }
 0x173   : > { %v3300_v49 = vpop.permute.xlu1 %3299  ;;  %v3295_v22 = vpop.permute.xlu0 %3294 }
 0x174   : > { %v3302_v31 = vunpack.i.h.bf16 %v3300_v49  ;;  %v3301_v50 = vunpack.i.l.bf16 %v3300_v49  ;;  %v3297_v41 = vunpack.i.h.bf16 %v3295_v22  ;;  %v3296_v21 = vunpack.i.l.bf16 %v3295_v22 }
 0x176   : > { %v2094_v45 = vsel %vm2075_vm11, %v2061_v24, %v3301_v50  ;;  %v2095_v58 = vsel %vm2075_vm11, %v2062_v51, %v3302_v31  ;;  %v2092_v60 = vsel %vm2075_vm11, %v2059_v17, %v3296_v21  ;;  %v2093_v14 = vsel %vm2075_vm11, %v2060_v37, %v3297_v41  ;;  %v5543_v31 = vld [vmem:[#allocation22_spill] sm:$0xff] }
 0x177   : > { %v3310_v26 = vpop.permute.xlu1 %3309  ;;  %v3305_v47 = vpop.permute.xlu0 %3304 }
 0x178   : > { %v3312_v34 = vunpack.i.h.bf16 %v3310_v26  ;;  %v3311_v4 = vunpack.i.l.bf16 %v3310_v26  ;;  %v3307_v7 = vunpack.i.h.bf16 %v3305_v47  ;;  %v3306_v10 = vunpack.i.l.bf16 %v3305_v47 }
 0x17a   : > { %v2127_v12 = vsel %vm2108_vm12, %v2094_v45, %v3311_v4  ;;  %v2128_v11 = vsel %vm2108_vm12, %v2095_v58, %v3312_v34  ;;  %v2125_v15 = vsel %vm2108_vm12, %v2092_v60, %v3306_v10  ;;  %v2126_v44 = vsel %vm2108_vm12, %v2093_v14, %v3307_v7 }
 0x17b   : > { %v3320_v48 = vpop.permute.xlu1 %3319  ;;  %v3315_v1 = vpop.permute.xlu0 %3314 }
 0x17c   : > { %v3322_v6 = vunpack.i.h.bf16 %v3320_v48  ;;  %v3321_v13 = vunpack.i.l.bf16 %v3320_v48  ;;  %v3317_v19 = vunpack.i.h.bf16 %v3315_v1  ;;  %v3316_v56 = vunpack.i.l.bf16 %v3315_v1 }
 0x17e   : > { %v2160_v28 = vsel %vm2141_vm13, %v2127_v12, %v3321_v13  ;;  %v2161_v36 = vsel %vm2141_vm13, %v2128_v11, %v3322_v6  ;;  %v2158_v0 = vsel %vm2141_vm13, %v2125_v15, %v3316_v56  ;;  %v2159_v2 = vsel %vm2141_vm13, %v2126_v44, %v3317_v19 }
 0x17f   : > { %v3330_v59 = vpop.permute.xlu1 %3329  ;;  %v3325_v62 = vpop.permute.xlu0 %3324 }
 0x180   : > { %v3332_v29 = vunpack.i.h.bf16 %v3330_v59  ;;  %v3331_v33 = vunpack.i.l.bf16 %v3330_v59  ;;  %v3327_v39 = vunpack.i.h.bf16 %v3325_v62  ;;  %v3326_v43 = vunpack.i.l.bf16 %v3325_v62 }
 0x182   : > { %v2193_v3 = vsel %vm2174_vm14, %v2160_v28, %v3331_v33  ;;  %v2194_v32 = vsel %vm2174_vm14, %v2161_v36, %v3332_v29  ;;  %v2191_v61 = vsel %vm2174_vm14, %v2158_v0, %v3326_v43  ;;  %v2192_v38 = vsel %vm2174_vm14, %v2159_v2, %v3327_v39 }
 0x183   : > { %v2216_v25 = vpack.c.bf16 %v2194_v32, %v2193_v3  ;;  %v3340_v20 = vpop.permute.xlu1 %3339  ;;  %v3335_v8 = vpop.permute.xlu0 %3334  ;;  %v2215_v63 = vpack.c.bf16 %v2192_v38, %v2191_v61 }
 0x184   : > { %v3342_v49 = vunpack.i.h.bf16 %v3340_v20  ;;  %v3341_v22 = vunpack.i.l.bf16 %v3340_v20  ;;  %v3337_v18 = vunpack.i.h.bf16 %v3335_v8  ;;  %v3336_v27 = vunpack.i.l.bf16 %v3335_v8 }
 0x185   : > { %2780 = vmatprep.mubr.msk.bf16.mxu1 %vm2243_vm15, %v2215_v63 }
 0x186   : > { %2781 = vmatmul.mubr.msk.bf16.vlgmr.msra.gmra.mrb[0].mxu1 %vm2243_vm15, %v2216_v25  ;;  %v2033_v47 = vsel %vm2009_vm9, %v5540_v9, %v3342_v49  ;;  %v2032_v16 = vsel %vm2009_vm9, %v5541_v52, %v3341_v22  ;;  %v2030_v54 = vsel %vm2009_vm9, %v5542_v35, %v3336_v27  ;;  %v2031_v50 = vsel %vm2009_vm9, %v5543_v31, %v3337_v18  ;;  %v5544_v52 = vld [vmem:[#allocation24_spill] sm:$0xff]  ;;  %v5546_v31 = vld [vmem:[#allocation35_spill] sm:$0xff] }
 0x187   : > { %v3350_v40 = vpop.permute.xlu1 %3349  ;;  %v3345_v55 = vpop.permute.xlu0 %3344 }
 0x188   : > { %v3352_v46 = vunpack.i.h.bf16 %v3350_v40  ;;  %v3351_v26 = vunpack.i.l.bf16 %v3350_v40  ;;  %v3347_v42 = vunpack.i.h.bf16 %v3345_v55  ;;  %v3346_v57 = vunpack.i.l.bf16 %v3345_v55 }
 0x18a   : > { %v2065_v7 = vsel %vm2042_vm10, %v2032_v16, %v3351_v26  ;;  %v2066_v10 = vsel %vm2042_vm10, %v2033_v47, %v3352_v46  ;;  %v2063_v6 = vsel %vm2042_vm10, %v2030_v54, %v3346_v57  ;;  %v2064_v13 = vsel %vm2042_vm10, %v2031_v50, %v3347_v42  ;;  %v5545_v42 = vld [vmem:[#allocation25_spill] sm:$0xff] }
 0x18b   : > { %v3360_v30 = vpop.permute.xlu1 %3359  ;;  %v3355_v23 = vpop.permute.xlu0 %3354 }
 0x18c   : > { %v3362_v41 = vunpack.i.h.bf16 %v3360_v30  ;;  %v3361_v21 = vunpack.i.l.bf16 %v3360_v30  ;;  %v3357_v34 = vunpack.i.h.bf16 %v3355_v23  ;;  %v3356_v4 = vunpack.i.l.bf16 %v3355_v23 }
 0x18e   : > { %v2098_v19 = vsel %vm2075_vm11, %v2065_v7, %v3361_v21  ;;  %v2099_v56 = vsel %vm2075_vm11, %v2066_v10, %v3362_v41  ;;  %v2096_v12 = vsel %vm2075_vm11, %v2063_v6, %v3356_v4  ;;  %v2097_v11 = vsel %vm2075_vm11, %v2064_v13, %v3357_v34  ;;  %v5547_v41 = vld [vmem:[#allocation36_spill] sm:$0xff] }
 0x18f   : > { %v3370_v53 = vpop.permute.xlu1 %3369  ;;  %v3365_v5 = vpop.permute.xlu0 %3364 }
 0x190   : > { %v3372_v48 = vunpack.i.h.bf16 %v3370_v53  ;;  %v3371_v24 = vunpack.i.l.bf16 %v3370_v53  ;;  %v3367_v1 = vunpack.i.h.bf16 %v3365_v5  ;;  %v3366_v17 = vunpack.i.l.bf16 %v3365_v5 }
 0x192   : > { %v2131_v59 = vsel %vm2108_vm12, %v2098_v19, %v3371_v24  ;;  %v2132_v15 = vsel %vm2108_vm12, %v2099_v56, %v3372_v48  ;;  %v2129_v29 = vsel %vm2108_vm12, %v2096_v12, %v3366_v17  ;;  %v2130_v33 = vsel %vm2108_vm12, %v2097_v11, %v3367_v1 }
 0x193   : > { %v3380_v51 = vpop.permute.xlu1 %3379  ;;  %v3375_v37 = vpop.permute.xlu0 %3374 }
 0x194   : > { %v3382_v45 = vunpack.i.h.bf16 %v3380_v51  ;;  %v3381_v58 = vunpack.i.l.bf16 %v3380_v51  ;;  %v3377_v60 = vunpack.i.h.bf16 %v3375_v37  ;;  %v3376_v14 = vunpack.i.l.bf16 %v3375_v37 }
 0x196   : > { %v2164_v39 = vsel %vm2141_vm13, %v2131_v59, %v3381_v58  ;;  %v2165_v43 = vsel %vm2141_vm13, %v2132_v15, %v3382_v45  ;;  %v2162_v0 = vsel %vm2141_vm13, %v2129_v29, %v3376_v14  ;;  %v2163_v2 = vsel %vm2141_vm13, %v2130_v33, %v3377_v60 }
 0x197   : > { %v3390_v44 = vpop.permute.xlu1 %3389  ;;  %v3385_v36 = vpop.permute.xlu0 %3384 }
 0x198   : > { %v3392_v62 = vunpack.i.h.bf16 %v3390_v44  ;;  %v3391_v28 = vunpack.i.l.bf16 %v3390_v44  ;;  %v3387_v3 = vunpack.i.h.bf16 %v3385_v36  ;;  %v3386_v32 = vunpack.i.l.bf16 %v3385_v36 }
 0x19a   : > { %v2197_v25 = vsel %vm2174_vm14, %v2164_v39, %v3391_v28  ;;  %v2198_v20 = vsel %vm2174_vm14, %v2165_v43, %v3392_v62  ;;  %v2195_v38 = vsel %vm2174_vm14, %v2162_v0, %v3386_v32  ;;  %v2196_v8 = vsel %vm2174_vm14, %v2163_v2, %v3387_v3 }
 0x19b   : > { %v2218_v61 = vpack.c.bf16 %v2198_v20, %v2197_v25  ;;  %v3400_v63 = vpop.permute.xlu1 %3399  ;;  %v2217_v40 = vpack.c.bf16 %v2196_v8, %v2195_v38  ;;  %v3395_v55 = vpop.permute.xlu0 %3394 }
 0x19c   : > { %v3402_v18 = vunpack.i.h.bf16 %v3400_v63  ;;  %v3401_v27 = vunpack.i.l.bf16 %v3400_v63  ;;  %v3397_v53 = vunpack.i.h.bf16 %v3395_v55  ;;  %v3396_v46 = vunpack.i.l.bf16 %v3395_v55 }
 0x19d   : > { %2784 = vmatprep.mubr.msk.bf16.mxu1 %vm2243_vm15, %v2217_v40 }
 0x19e   : > { %2785 = vmatmul.mubr.msk.bf16.gmra.mrb[4].mxu1 %vm2243_vm15, %v2218_v61  ;;  %v2037_v16 = vsel %vm2009_vm9, %v5544_v52, %v3402_v18  ;;  %v2036_v57 = vsel %vm2009_vm9, %v5545_v42, %v3401_v27  ;;  %v2034_v50 = vsel %vm2009_vm9, %v5546_v31, %v3396_v46  ;;  %v2035_v21 = vsel %vm2009_vm9, %v5547_v41, %v3397_v53  ;;  %v5548_v42 = vld [vmem:[#allocation23_spill] sm:$0xff]  ;;  %v5550_v41 = vld [vmem:[#allocation38_spill] sm:$0xff] }
 0x19f   : > { %v3410_v30 = vpop.permute.xlu1 %3409 }
 0x1a0   : > { %v3405_v23 = vpop.permute.xlu0 %3404  ;;  %v3412_v5 = vunpack.i.h.bf16 %v3410_v30  ;;  %v3411_v9 = vunpack.i.l.bf16 %v3410_v30 }
 0x1a1   : > { %v3407_v35 = vunpack.i.h.bf16 %v3405_v23  ;;  %v3406_v54 = vunpack.i.l.bf16 %v3405_v23 }
 0x1a2   : > { %v2069_v1 = vsel %vm2042_vm10, %v2036_v57, %v3411_v9  ;;  %v2070_v17 = vsel %vm2042_vm10, %v2037_v16, %v3412_v5 }
 0x1a3   : > { %v3420_v49 = vpop.permute.xlu1 %3419  ;;  %v2067_v45 = vsel %vm2042_vm10, %v2034_v50, %v3406_v54  ;;  %v2068_v58 = vsel %vm2042_vm10, %v2035_v21, %v3407_v35  ;;  %v5549_v35 = vld [vmem:[#allocation37_spill] sm:$0xff] }
 0x1a4   : > { %v3415_v22 = vpop.permute.xlu0 %3414  ;;  %v3422_v34 = vunpack.i.h.bf16 %v3420_v49  ;;  %v3421_v4 = vunpack.i.l.bf16 %v3420_v49 }
 0x1a5   : > { %v3417_v48 = vunpack.i.h.bf16 %v3415_v22  ;;  %v3416_v24 = vunpack.i.l.bf16 %v3415_v22 }
 0x1a6   : > { %v2102_v60 = vsel %vm2075_vm11, %v2069_v1, %v3421_v4  ;;  %v2103_v14 = vsel %vm2075_vm11, %v2070_v17, %v3422_v34  ;;  %v5551_v34 = vld [vmem:[#allocation39_spill] sm:$0xff] }
 0x1a7   : > { %v3430_v26 = vpop.permute.xlu1 %3429  ;;  %v2100_v59 = vsel %vm2075_vm11, %v2067_v45, %v3416_v24  ;;  %v2101_v15 = vsel %vm2075_vm11, %v2068_v58, %v3417_v48 }
 0x1a8   : > { %v3425_v47 = vpop.permute.xlu0 %3424  ;;  %v3432_v51 = vunpack.i.h.bf16 %v3430_v26  ;;  %v3431_v7 = vunpack.i.l.bf16 %v3430_v26 }
 0x1a9   : > { %v3427_v37 = vunpack.i.h.bf16 %v3425_v47  ;;  %v3426_v6 = vunpack.i.l.bf16 %v3425_v47 }
 0x1aa   : > { %v2135_v44 = vsel %vm2108_vm12, %v2102_v60, %v3431_v7  ;;  %v2136_v29 = vsel %vm2108_vm12, %v2103_v14, %v3432_v51 }
 0x1ab   : > { %v3440_v10 = vpop.permute.xlu1 %3439  ;;  %v2133_v62 = vsel %vm2108_vm12, %v2100_v59, %v3426_v6  ;;  %v2134_v28 = vsel %vm2108_vm12, %v2101_v15, %v3427_v37 }
 0x1ac   : > { %v3435_v13 = vpop.permute.xlu0 %3434  ;;  %v3442_v19 = vunpack.i.h.bf16 %v3440_v10  ;;  %v3441_v56 = vunpack.i.l.bf16 %v3440_v10 }
 0x1ad   : > { %v3437_v12 = vunpack.i.h.bf16 %v3435_v13  ;;  %v3436_v11 = vunpack.i.l.bf16 %v3435_v13 }
 0x1ae   : > { %v2168_v3 = vsel %vm2141_vm13, %v2135_v44, %v3441_v56  ;;  %v2169_v32 = vsel %vm2141_vm13, %v2136_v29, %v3442_v19 }
 0x1af   : > { %v3450_v33 = vpop.permute.xlu1 %3449  ;;  %v2166_v25 = vsel %vm2141_vm13, %v2133_v62, %v3436_v11  ;;  %v2167_v20 = vsel %vm2141_vm13, %v2134_v28, %v3437_v12 }
 0x1b0   : > { %v3452_v36 = vunpack.i.h.bf16 %v3450_v33  ;;  %v3451_v39 = vunpack.i.l.bf16 %v3450_v33  ;;  %v3445_v43 = vpop.permute.xlu0 %3444 }
 0x1b1   : > { %v3447_v0 = vunpack.i.h.bf16 %v3445_v43  ;;  %v3446_v2 = vunpack.i.l.bf16 %v3445_v43 }
 0x1b2   : > { %v2201_v61 = vsel %vm2174_vm14, %v2168_v3, %v3451_v39  ;;  %v2202_v38 = vsel %vm2174_vm14, %v2169_v32, %v3452_v36 }
 0x1b3   : > { %v2220_v8 = vpack.c.bf16 %v2202_v38, %v2201_v61  ;;  %v2199_v63 = vsel %vm2174_vm14, %v2166_v25, %v3446_v2  ;;  %v2200_v40 = vsel %vm2174_vm14, %v2167_v20, %v3447_v0  ;;  %v3460_v55 = vpop.permute.xlu1 %3459 }
 0x1b4   : > { %v2219_v30 = vpack.c.bf16 %v2200_v40, %v2199_v63  ;;  %v3455_v23 = vpop.permute.xlu0 %3454  ;;  %v3462_v53 = vunpack.i.h.bf16 %v3460_v55  ;;  %v3461_v46 = vunpack.i.l.bf16 %v3460_v55 }
 0x1b5   : > { %v3457_v26 = vunpack.i.h.bf16 %v3455_v23  ;;  %v3456_v5 = vunpack.i.l.bf16 %v3455_v23 }
 0x1b6   : > { %2788 = vmatprep.mubr.msk.bf16.mxu1 %vm2243_vm15, %v2219_v30  ;;  %v2041_v57 = vsel %vm2009_vm9, %v5548_v42, %v3462_v53  ;;  %v2040_v54 = vsel %vm2009_vm9, %v5549_v35, %v3461_v46 }
 0x1b7   : > { %2789 = vmatmul.mubr.msk.bf16.gmra.mrb[8].mxu1 %vm2243_vm15, %v2220_v8  ;;  %v3470_v49 = vpop.permute.xlu1 %3469  ;;  %v2038_v21 = vsel %vm2009_vm9, %v5550_v41, %v3456_v5  ;;  %v2039_v4 = vsel %vm2009_vm9, %v5551_v34, %v3457_v26 }
 0x1b8   : > { %v3465_v22 = vpop.permute.xlu0 %3464  ;;  %v3472_v47 = vunpack.i.h.bf16 %v3470_v49  ;;  %v3471_v52 = vunpack.i.l.bf16 %v3470_v49 }
 0x1b9   : > { %v3467_v31 = vunpack.i.h.bf16 %v3465_v22  ;;  %v3466_v50 = vunpack.i.l.bf16 %v3465_v22 }
 0x1ba   : > { %v2073_v37 = vsel %vm2042_vm10, %v2040_v54, %v3471_v52  ;;  %v2074_v6 = vsel %vm2042_vm10, %v2041_v57, %v3472_v47 }
 0x1bb   : > { %v3480_v18 = vpop.permute.xlu1 %3479  ;;  %v2071_v19 = vsel %vm2042_vm10, %v2038_v21, %v3466_v50  ;;  %v2072_v56 = vsel %vm2042_vm10, %v2039_v4, %v3467_v31 }
 0x1bc   : > { %v3475_v27 = vpop.permute.xlu0 %3474  ;;  %v3482_v48 = vunpack.i.h.bf16 %v3480_v18  ;;  %v3481_v24 = vunpack.i.l.bf16 %v3480_v18 }
 0x1bd   : > { %v3477_v51 = vunpack.i.h.bf16 %v3475_v27  ;;  %v3476_v7 = vunpack.i.l.bf16 %v3475_v27 }
 0x1be   : > { %v2106_v12 = vsel %vm2075_vm11, %v2073_v37, %v3481_v24  ;;  %v2107_v11 = vsel %vm2075_vm11, %v2074_v6, %v3482_v48 }
 0x1bf   : > { %v3490_v9 = vpop.permute.xlu1 %3489  ;;  %v2104_v44 = vsel %vm2075_vm11, %v2071_v19, %v3476_v7  ;;  %v2105_v29 = vsel %vm2075_vm11, %v2072_v56, %v3477_v51 }
 0x1c0   : > { %v3485_v16 = vpop.permute.xlu0 %3484  ;;  %v3492_v10 = vunpack.i.h.bf16 %v3490_v9  ;;  %v3491_v1 = vunpack.i.l.bf16 %v3490_v9 }
 0x1c1   : > { %v3487_v13 = vunpack.i.h.bf16 %v3485_v16  ;;  %v3486_v45 = vunpack.i.l.bf16 %v3485_v16 }
 0x1c2   : > { %v2139_v33 = vsel %vm2108_vm12, %v2106_v12, %v3491_v1  ;;  %v2140_v62 = vsel %vm2108_vm12, %v2107_v11, %v3492_v10 }
 0x1c3   : > { %v3500_v17 = vpop.permute.xlu1 %3499  ;;  %v2137_v36 = vsel %vm2108_vm12, %v2104_v44, %v3486_v45  ;;  %v2138_v39 = vsel %vm2108_vm12, %v2105_v29, %v3487_v13 }
 0x1c4   : > { %v3495_v58 = vpop.permute.xlu0 %3494  ;;  %v3502_v60 = vunpack.i.h.bf16 %v3500_v17  ;;  %v3501_v14 = vunpack.i.l.bf16 %v3500_v17 }
 0x1c5   : > { %v3497_v59 = vunpack.i.h.bf16 %v3495_v58  ;;  %v3496_v15 = vunpack.i.l.bf16 %v3495_v58 }
 0x1c6   : > { %v2172_v0 = vsel %vm2141_vm13, %v2139_v33, %v3501_v14  ;;  %v2173_v2 = vsel %vm2141_vm13, %v2140_v62, %v3502_v60 }
 0x1c7   : > { %v3510_v28 = vpop.permute.xlu1 %3509  ;;  %v2170_v61 = vsel %vm2141_vm13, %v2137_v36, %v3496_v15  ;;  %v2171_v38 = vsel %vm2141_vm13, %v2138_v39, %v3497_v59 }
 0x1c8   : > { %v3512_v43 = vunpack.i.h.bf16 %v3510_v28  ;;  %v3511_v3 = vunpack.i.l.bf16 %v3510_v28  ;;  %v3505_v32 = vpop.permute.xlu0 %3504 }
 0x1c9   : > { %v3507_v25 = vunpack.i.h.bf16 %v3505_v32  ;;  %v3506_v20 = vunpack.i.l.bf16 %v3505_v32 }
 0x1ca   : > { %v2205_v8 = vsel %vm2174_vm14, %v2172_v0, %v3511_v3  ;;  %v2206_v63 = vsel %vm2174_vm14, %v2173_v2, %v3512_v43 }
 0x1cb   : > { %v2222_v40 = vpack.c.bf16 %v2206_v63, %v2205_v8  ;;  %v2203_v55 = vsel %vm2174_vm14, %v2170_v61, %v3506_v20  ;;  %v2204_v30 = vsel %vm2174_vm14, %v2171_v38, %v3507_v25 }
 0x1cc   : > { %v2221_v23 = vpack.c.bf16 %v2204_v30, %v2203_v55 }
 0x1ce   : > { %2792 = vmatprep.mubr.msk.bf16.mxu1 %vm2243_vm15, %v2221_v23 }
 0x1cf   : > { %2793 = vmatmul.mubr.msk.bf16.gmra.mrb[12].mxu1 %vm2243_vm15, %v2222_v40 }
 0x204   : > { %v2766_v49 = vpop.f32.mrb[0].mxu0 }
 0x205   : > { %v2330_v22 = vpop.f32.mrb[1].mxu0  ;;  %v2497_v5 = vmul.f32 %v2766_v49, %v2766_v49 }
 0x206   : > { %v2767_v18 = vpop.f32.mrb[2].mxu0  ;;  %v2495_v53 = vmul.f32 %v2330_v22, %v2330_v22 }
 0x207   : > { %v2333_v27 = vpop.f32.mrb[3].mxu0  ;;  %v2498_v52 = vmul.f32 %v2767_v18, %v2767_v18 }
 0x208   : > { %v2457_v46 = vadd.f32 %v2333_v27, %v2330_v22  ;;  %v2496_v26 = vmul.f32 %v2333_v27, %v2333_v27 }
 0x20a   : > { %v2458_v9 = vadd.f32 %v2766_v49, %v2457_v46  ;;  %v2527_v47 = vadd.f32 %v2496_v26, %v2495_v53 }
 0x20c   : > { %v2528_v16 = vadd.f32 %v2527_v47, %v2497_v5  ;;  %v2459_v42 = vadd.f32 %v2767_v18, %v2458_v9 }
 0x20e   : > { %v2529_v57 = vadd.f32 %v2528_v16, %v2498_v52 }
 0x218   : > { %v2770_v35 = vpop.f32.mrb[4].mxu0 }
 0x219   : > { %v2346_v54 = vpop.f32.mrb[5].mxu0  ;;  %v2501_v24 = vmul.f32 %v2770_v35, %v2770_v35 }
 0x21a   : > { %v2460_v31 = vadd.f32 %v2459_v42, %v2346_v54  ;;  %v2499_v50 = vmul.f32 %v2346_v54, %v2346_v54  ;;  %v2771_v41 = vpop.f32.mrb[6].mxu0 }
 0x21b   : > { %v2349_v21 = vpop.f32.mrb[7].mxu0  ;;  %v2502_v10 = vmul.f32 %v2771_v41, %v2771_v41 }
 0x21c   : > { %v2530_v34 = vadd.f32 %v2529_v57, %v2499_v50  ;;  %v2461_v4 = vadd.f32 %v2460_v31, %v2349_v21  ;;  %v2500_v48 = vmul.f32 %v2349_v21, %v2349_v21 }
 0x21e   : > { %v2462_v51 = vadd.f32 %v2770_v35, %v2461_v4  ;;  %v2531_v7 = vadd.f32 %v2530_v34, %v2500_v48 }
 0x220   : > { %v2532_v1 = vadd.f32 %v2531_v7, %v2501_v24  ;;  %v2463_v17 = vadd.f32 %v2771_v41, %v2462_v51 }
 0x222   : > { %v2533_v37 = vadd.f32 %v2532_v1, %v2502_v10 }
 0x22c   : > { %v2774_v6 = vpop.f32.mrb[8].mxu0 }
 0x22d   : > { %v2362_v13 = vpop.f32.mrb[9].mxu0  ;;  %v2505_v11 = vmul.f32 %v2774_v6, %v2774_v6 }
 0x22e   : > { %v2464_v45 = vadd.f32 %v2463_v17, %v2362_v13  ;;  %v2503_v58 = vmul.f32 %v2362_v13, %v2362_v13  ;;  %v2775_v19 = vpop.f32.mrb[10].mxu0 }
 0x22f   : > { %v2365_v56 = vpop.f32.mrb[11].mxu0  ;;  %v2506_v44 = vmul.f32 %v2775_v19, %v2775_v19 }
 0x230   : > { %v2534_v60 = vadd.f32 %v2533_v37, %v2503_v58  ;;  %v2465_v14 = vadd.f32 %v2464_v45, %v2365_v56  ;;  %v2504_v12 = vmul.f32 %v2365_v56, %v2365_v56 }
 0x232   : > { %v2466_v59 = vadd.f32 %v2774_v6, %v2465_v14  ;;  %v2535_v15 = vadd.f32 %v2534_v60, %v2504_v12 }
 0x234   : > { %v2536_v29 = vadd.f32 %v2535_v15, %v2505_v11  ;;  %v2467_v33 = vadd.f32 %v2775_v19, %v2466_v59 }
 0x236   : > { %v2537_v62 = vadd.f32 %v2536_v29, %v2506_v44 }
 0x241   : > { %v2778_v28 = vpop.f32.mrb[12].mxu0 }
 0x242   : > { %v2378_v36 = vpop.f32.mrb[13].mxu0  ;;  %v2509_v20 = vmul.f32 %v2778_v28, %v2778_v28 }
 0x243   : > { %v2468_v39 = vadd.f32 %v2467_v33, %v2378_v36  ;;  %v2507_v43 = vmul.f32 %v2378_v36, %v2378_v36  ;;  %v2779_v3 = vpop.f32.mrb[14].mxu0 }
 0x244   : > { %v2381_v32 = vpop.f32.mrb[15].mxu0  ;;  %v2510_v8 = vmul.f32 %v2779_v3, %v2779_v3 }
 0x245   : > { %v2538_v0 = vadd.f32 %v2537_v62, %v2507_v43  ;;  %v2469_v2 = vadd.f32 %v2468_v39, %v2381_v32  ;;  %v2508_v25 = vmul.f32 %v2381_v32, %v2381_v32 }
 0x247   : > { %v2470_v61 = vadd.f32 %v2778_v28, %v2469_v2  ;;  %v2539_v38 = vadd.f32 %v2538_v0, %v2508_v25 }
 0x249   : > { %v2540_v63 = vadd.f32 %v2539_v38, %v2509_v20  ;;  %v2471_v40 = vadd.f32 %v2779_v3, %v2470_v61 }
 0x24b   : > { %v2541_v55 = vadd.f32 %v2540_v63, %v2510_v8 }
 0x259   : > { %v2782_v30 = vpop.f32.mrb[0].mxu1 }
 0x25a   : > { %v2394_v23 = vpop.f32.mrb[1].mxu1  ;;  %v2513_v5 = vmul.f32 %v2782_v30, %v2782_v30 }
 0x25b   : > { %v2472_v49 = vadd.f32 %v2471_v40, %v2394_v23  ;;  %v2511_v22 = vmul.f32 %v2394_v23, %v2394_v23  ;;  %v2783_v18 = vpop.f32.mrb[2].mxu1 }
 0x25c   : > { %v2397_v27 = vpop.f32.mrb[3].mxu1  ;;  %v2514_v52 = vmul.f32 %v2783_v18, %v2783_v18 }
 0x25d   : > { %v2542_v53 = vadd.f32 %v2541_v55, %v2511_v22  ;;  %v2473_v46 = vadd.f32 %v2472_v49, %v2397_v27  ;;  %v2512_v26 = vmul.f32 %v2397_v27, %v2397_v27 }
 0x25f   : > { %v2474_v9 = vadd.f32 %v2782_v30, %v2473_v46  ;;  %v2543_v47 = vadd.f32 %v2542_v53, %v2512_v26 }
 0x261   : > { %v2544_v16 = vadd.f32 %v2543_v47, %v2513_v5  ;;  %v2475_v42 = vadd.f32 %v2783_v18, %v2474_v9 }
 0x263   : > { %v2545_v57 = vadd.f32 %v2544_v16, %v2514_v52 }
 0x271   : > { %v2786_v35 = vpop.f32.mrb[4].mxu1 }
 0x272   : > { %v2410_v54 = vpop.f32.mrb[5].mxu1  ;;  %v2517_v24 = vmul.f32 %v2786_v35, %v2786_v35 }
 0x273   : > { %v2476_v31 = vadd.f32 %v2475_v42, %v2410_v54  ;;  %v2515_v50 = vmul.f32 %v2410_v54, %v2410_v54  ;;  %v2787_v41 = vpop.f32.mrb[6].mxu1 }
 0x274   : > { %v2413_v21 = vpop.f32.mrb[7].mxu1  ;;  %v2518_v10 = vmul.f32 %v2787_v41, %v2787_v41 }
 0x275   : > { %v2546_v34 = vadd.f32 %v2545_v57, %v2515_v50  ;;  %v2477_v4 = vadd.f32 %v2476_v31, %v2413_v21  ;;  %v2516_v48 = vmul.f32 %v2413_v21, %v2413_v21 }
 0x277   : > { %v2478_v51 = vadd.f32 %v2786_v35, %v2477_v4  ;;  %v2547_v7 = vadd.f32 %v2546_v34, %v2516_v48 }
 0x279   : > { %v2548_v1 = vadd.f32 %v2547_v7, %v2517_v24  ;;  %v2479_v17 = vadd.f32 %v2787_v41, %v2478_v51 }
 0x27b   : > { %v2549_v37 = vadd.f32 %v2548_v1, %v2518_v10 }
 0x28a   : > { %v2790_v6 = vpop.f32.mrb[8].mxu1 }
 0x28b   : > { %v2426_v13 = vpop.f32.mrb[9].mxu1  ;;  %v2521_v11 = vmul.f32 %v2790_v6, %v2790_v6 }
 0x28c   : > { %v2480_v45 = vadd.f32 %v2479_v17, %v2426_v13  ;;  %v2519_v58 = vmul.f32 %v2426_v13, %v2426_v13  ;;  %v2791_v19 = vpop.f32.mrb[10].mxu1 }
 0x28d   : > { %v2429_v56 = vpop.f32.mrb[11].mxu1  ;;  %v2522_v44 = vmul.f32 %v2791_v19, %v2791_v19 }
 0x28e   : > { %v2550_v60 = vadd.f32 %v2549_v37, %v2519_v58  ;;  %v2481_v14 = vadd.f32 %v2480_v45, %v2429_v56  ;;  %v2520_v12 = vmul.f32 %v2429_v56, %v2429_v56 }
 0x290   : > { %v2482_v59 = vadd.f32 %v2790_v6, %v2481_v14  ;;  %v2551_v15 = vadd.f32 %v2550_v60, %v2520_v12 }
 0x292   : > { %v2552_v29 = vadd.f32 %v2551_v15, %v2521_v11  ;;  %v2483_v33 = vadd.f32 %v2791_v19, %v2482_v59 }
 0x294   : > { %v2553_v62 = vadd.f32 %v2552_v29, %v2522_v44 }
 0x2a2   : > { %v2794_v28 = vpop.f32.mrb[12].mxu1 }
 0x2a3   : > { %v2442_v36 = vpop.f32.mrb[13].mxu1  ;;  %v2525_v20 = vmul.f32 %v2794_v28, %v2794_v28 }
 0x2a4   : > { %v2484_v39 = vadd.f32 %v2483_v33, %v2442_v36  ;;  %v2523_v43 = vmul.f32 %v2442_v36, %v2442_v36  ;;  %v2795_v3 = vpop.f32.mrb[14].mxu1 }
 0x2a5   : > { %v2445_v32 = vpop.f32.mrb[15].mxu1  ;;  %v2526_v8 = vmul.f32 %v2795_v3, %v2795_v3 }
 0x2a6   : > { %v2554_v0 = vadd.f32 %v2553_v62, %v2523_v43  ;;  %v2485_v2 = vadd.f32 %v2484_v39, %v2445_v32  ;;  %v2524_v25 = vmul.f32 %v2445_v32, %v2445_v32 }
 0x2a8   : > { %v2486_v61 = vadd.f32 %v2794_v28, %v2485_v2  ;;  %v2555_v38 = vadd.f32 %v2554_v0, %v2524_v25 }
 0x2aa   : > { %v2487_v63 = vadd.f32 %v2795_v3, %v2486_v61  ;;  %v2556_v40 = vadd.f32 %v2555_v38, %v2525_v20 }
 0x2ac   : > { %v2488_v55 = vrot.slane %v2487_v63, 4  ;;  %v2557_v30 = vadd.f32 %v2556_v40, %v2526_v8 }
 0x2ae   : > { %v2489_v23 = vadd.f32 %v2488_v55, %v2487_v63  ;;  %v2558_v49 = vrot.slane %v2557_v30, 4 }
 0x2b0   : > { %v2490_v22 = vrot.slane %v2489_v23, 2  ;;  %v2559_v18 = vadd.f32 %v2558_v49, %v2557_v30 }
 0x2b2   : > { %v2491_v27 = vadd.f32 %v2490_v22, %v2489_v23  ;;  %v2560_v53 = vrot.slane %v2559_v18, 2 }
 0x2b4   : > { %v2492_v46 = vrot.slane %v2491_v27, 1  ;;  %v2561_v26 = vadd.f32 %v2560_v53, %v2559_v18 }
 0x2b6   : > { %v2493_v5 = vadd.f32 %v2492_v46, %v2491_v27  ;;  %v2562_v9 = vrot.slane %v2561_v26, 1 }
 0x2b8   : > { %2494 = vst [vmem:[%s182_s30] sm:$0x1] %v2493_v5  ;;  %v2563_v47 = vadd.f32 %v2562_v9, %v2561_v26 }
 0x2b9   : > { %3540 = shalt.err (!%p3537_p5)
}
 0x2ba   : > { %s3541_s27 = scalar_lea.hbm %s5248_s9, 16  ;;  %s3545_s7 = scalar_lea.hbm %s5329_s2, 32 }
 0x2bb   : > { %p3542_p6 = scmp.ne.s32.totalorder %s5248_s9, %s3541_s27  ;;  %p3546_p10 = scmp.lt.u32.totalorder %s5248_s9, %s5329_s2 }
 0x2bc   : > { %p3547_p11 = scmp.lt.u32.totalorder %s3545_s7, %s3541_s27  ;;  %p3549_p13 = scmp.lt.u32.totalorder %s3541_s27, %s5248_s9 }
 0x2bd   : > { %p3543_p7 = pnand %p3542_p6, %p3709_p4 }
 0x2be   : > { %p3548_p12 = por %p3547_p11, %p3546_p10 }
 0x2bf   : > { %p3544_p9 = pneg %p3543_p7 }
 0x2c0   : > { %p3550_p0 = por %p3549_p13, %p3548_p12 }
 0x2c2   : > { %p3551_p1 = pnand %p3550_p0, %p3544_p9 }
 0x2c4   : > { %3554 = shalt.err (!%p3551_p1)
}
 0x2c5   : > { %2805 = dma.vmem_to_hbm [thread:$0]  (%p3709_p4), %s5250_s4, 16, %s5248_s9, %s2566_s18   ;;  %2564 = vst [vmem:[%s188_s5] sm:$0x1] %v2563_v47 }
 0x2c6   : > { %s2570_s10 = scalar_lea.sflag [#allocation5], %s5238_s28  ;;  %s3555_s19 = scalar_lea.vmem %s5257_s6, 16 }
 0x2c7   : > { %p3556_p2 = scmp.ne.s32.totalorder %s5257_s6, %s3555_s19  ;;  %s3648_s21 = smov [#allocation4]  }
 0x2c8   : > { %s3559_s23 = sshll.u32 %s3648_s21, 4  ;;  %s3560_s23 = int_to_ptr.vmem [resolvable:$false] %s3559_s23 }
 0x2c9   : > { %p3557_p3 = pnand %p3556_p2, %p3709_p4  ;;  %s3561_s26 = scalar_lea.vmem %s3560_s23, 32 }
 0x2ca   : > { %p3562_p6 = scmp.lt.s32.totalorder %s5257_s6, %s3560_s23  ;;  %p3563_p7 = scmp.lt.s32.totalorder %s3561_s26, %s3555_s19 }
 0x2cb   : > { %p3558_p5 = pneg %p3557_p3 }
 0x2cc   : > { %p3564_p9 = por %p3563_p7, %p3562_p6 }
 0x2ce   : > { %p3565_p10 = pnand %p3564_p9, %p3558_p5 }
 0x2d0   : > { %3568 = shalt.err (!%p3565_p10)
}
 0x2d1   : > { %s3569_s28 = scalar_lea.hbm %s5255_s11, 16  ;;  %s3573_s9 = scalar_lea.hbm %s5330_s3, 32 }
 0x2d2   : > { %p3570_p11 = scmp.ne.s32.totalorder %s5255_s11, %s3569_s28  ;;  %p3574_p0 = scmp.lt.u32.totalorder %s5255_s11, %s5330_s3 }
 0x2d3   : > { %p3575_p1 = scmp.lt.u32.totalorder %s3573_s9, %s3569_s28  ;;  %p3577_p3 = scmp.lt.u32.totalorder %s3569_s28, %s5255_s11 }
 0x2d4   : > { %p3571_p12 = pnand %p3570_p11, %p3709_p4 }
 0x2d5   : > { %p3576_p2 = por %p3575_p1, %p3574_p0 }
 0x2d6   : > { %p3572_p13 = pneg %p3571_p12 }
 0x2d7   : > { %p3578_p5 = por %p3577_p3, %p3576_p2 }
 0x2d9   : > { %p3579_p6 = pnand %p3578_p5, %p3572_p13 }
 0x2db   : > { %3582 = shalt.err (!%p3579_p6)
}
 0x2dc   : > { %2806 = dma.vmem_to_hbm [thread:$0]  (%p3709_p4), %s5257_s6, 16, %s5255_s11, %s2570_s10  }
 0x2dd PF: > { %p2816_p7 = scmp.ge.s32.totalorder %s3637_s17, 2  ;;  %s2609_s29 = sand.u32 1, %s3617_s12  }
 0x2de   : > { %s2610_s30 = scalar_lea.sflag [#allocation3], %s2609_s29 }
 0x2df   : > { %p2810_p9 = pnand %p2816_p7, %p3716_p8 }
 0x2e1   : > { %3608 = dma.done.wait (!%p2810_p9), %s2610_s30, 16  }
 0x2e2   : > { %3610 = vsyncadd (!%p2810_p9), %s2610_s30, 4294967280  ;;  %s2618_s7 = scalar_lea.sflag [#allocation5], %s2609_s29 }
 0x2e3   : > { %3612 = dma.done.wait (!%p2810_p9), %s2618_s7, 16  }
 0x2e4   : > { %3614 = vsyncadd (!%p2810_p9), %s2618_s7, 4294967280  ;;  %s20_s17 = sadd.s32 1, %s3637_s17   ;;  %s5552_s12 = smov %s3621_s13 }
 0x2e5   : > { %p17_p10 = scmp.ge.s32.totalorder %s20_s17, 4   ;;  %s5553_s13 = smov %s3625_s14 }
 0x2e6   : > { %s5554_s14 = smov %s3722_s25  ;;  %s5555_s15 = smov %s3633_s16 }
 0x2e7   : > { %s5556_s16 = smov %s5558_s20  ;;  %19 = sbr.rel (!%p17_p10) target bundleno = 6 (0x6), region = 81 }
 0x2ee   :  { %2622 = vsyncpa [#allocation3], 1 }
 0x2ef   :  { %2624 = vsyncpa [#allocation3 + $0x1], 1 }
 0x2f0   :  { %2625 = vsyncpa [#allocation5], 1 }
 0x2f1   :  { %2627 = vsyncpa [#allocation5 + $0x1], 1 }

</bundles_post_ra>
